<compile_context>
chip_gen: v6e
topology: v6e:2x2x1
jax: 0.10.0
libtpu: 0.0.40
codegen_flags: <defaults>
</compile_context>

<pallas_src>
import functools
import math

import jax
import jax.numpy as jnp
from jax import lax
from jax.experimental import pallas as pl
from jax.experimental.pallas import tpu as pltpu


def _attnpool_kernel(num_heads,
                     x_ref, posx_ref, pos0_ref,
                     wq_ref, bq_ref,
                     wkv_ref, bkv_ref,
                     wc_ref, bc_ref,
                     o_ref):
    # x_ref block: (B, T, C) bf16 tokens (channels on lanes) for B batch elems.
    B, T, C = x_ref.shape
    D = wc_ref.shape[1]
    hd = C // num_heads
    f32 = jnp.float32

    x = x_ref[...]                                          # (B, T, C) bf16

    # ---- mean token (query) path: mean over spatial tokens, + pos[0] --------
    mean_tok = jnp.mean(x.astype(f32), axis=1)              # (B, C) f32
    q_in = mean_tok + pos0_ref[...]                         # (B, C)
    q_in_b = q_in.astype(x.dtype)                           # bf16 for MXU

    # ---- spatial tokens: +pos, flatten, fused K/V projection (one big MXU op)
    x_pos = (x + posx_ref[...]).reshape(B * T, C)           # (B*T, C) bf16
    kv_x = jnp.dot(x_pos, wkv_ref[...],
                   preferred_element_type=f32) + bkv_ref[...]       # (B*T, 2C)

    # q / k / v for the mean token (scale is pre-folded into wq, bq)
    q = jnp.dot(q_in_b, wq_ref[...],
                preferred_element_type=f32) + bq_ref[...]           # (B, C)
    kv_m = jnp.dot(q_in_b, wkv_ref[...],
                   preferred_element_type=f32) + bkv_ref[...]       # (B, 2C)

    k_x = kv_x[:, :C]
    v_x = kv_x[:, C:]
    k_m = kv_m[:, :C]
    v_m = kv_m[:, C:]

    # ---- head-segment matrices: lane c belongs to head c // hd --------------
    c_idx = lax.broadcasted_iota(jnp.int32, (C, num_heads), 0)
    h_idx = lax.broadcasted_iota(jnp.int32, (C, num_heads), 1)
    seg = jnp.logical_and(c_idx >= h_idx * hd,
                          c_idx < (h_idx + 1) * hd).astype(f32)     # (C, H)
    h_idx_t = lax.broadcasted_iota(jnp.int32, (num_heads, C), 0)
    c_idx_t = lax.broadcasted_iota(jnp.int32, (num_heads, C), 1)
    segT = jnp.logical_and(c_idx_t >= h_idx_t * hd,
                           c_idx_t < (h_idx_t + 1) * hd).astype(f32)  # (H, C)

    # ---- scores: elementwise q*k (VPU) + per-head lane-group sum (seg matmul)
    q_exp = jnp.broadcast_to(q[:, None, :], (B, T, C)).reshape(B * T, C)
    s_x = jnp.dot(q_exp * k_x, seg, preferred_element_type=f32)     # (B*T, H)
    s_m = jnp.dot(q * k_m, seg, preferred_element_type=f32)         # (B, H)

    # ---- softmax over the (1 + T) tokens, per (batch, head) -----------------
    s_x3 = s_x.reshape(B, T, num_heads)
    m = jnp.maximum(s_m, jnp.max(s_x3, axis=1))                     # (B, H)
    e_m = jnp.exp(s_m - m)                                          # (B, H)
    e_x3 = jnp.exp(s_x3 - m[:, None, :])                            # (B, T, H)
    denom = e_m + jnp.sum(e_x3, axis=1)                             # (B, H)
    inv = pl.reciprocal(denom, approx=True)                         # (B, H)
    p_m = e_m * inv                                                 # (B, H)
    p_x = (e_x3 * inv[:, None, :]).reshape(B * T, num_heads)        # (B*T, H)

    # ---- weighted V: broadcast p over head lanes, reduce over tokens --------
    p_m_exp = jnp.dot(p_m, segT, preferred_element_type=f32)        # (B, C)
    p_x_exp = jnp.dot(p_x, segT, preferred_element_type=f32)        # (B*T, C)
    attn = (p_m_exp * v_m
            + jnp.sum((p_x_exp * v_x).reshape(B, T, C), axis=1))    # (B, C)

    # ---- output projection ---------------------------------------------------
    out = jnp.dot(attn.astype(wc_ref.dtype), wc_ref[...],
                  preferred_element_type=f32) + bc_ref[...]         # (B, D)
    o_ref[0] = out


def attention_pool_2d(x_nchw, params, num_heads, *, b_tile=8):
    """x_nchw: (N, C, H, W) float32. Returns (N, output_dim) float32."""
    N, C, H, W = x_nchw.shape
    T = H * W
    pos, wq, bq, wk, bk, wv, bv, wc, bc = params
    D = wc.shape[1]
    hd = C // num_heads
    scale = 1.0 / math.sqrt(hd)
    bf16 = jnp.bfloat16

    # ---- one-time parameter prep ---------------------------------------------
    pos0 = pos[0:1].astype(jnp.float32)                       # (1, C)
    pos_x = pos[1:].reshape(1, T, C).astype(bf16)              # (1, T, C)
    wq_s = (wq * scale).astype(bf16)                           # scale folded in
    bq_s = (bq * scale).astype(jnp.float32)
    wkv = jnp.concatenate([wk, wv], axis=1).astype(bf16)       # (C, 2C)
    bkv = jnp.concatenate([bk, bv], axis=1).astype(jnp.float32)  # (1, 2C)
    wc_b = wc.astype(bf16)
    bc_f = bc.astype(jnp.float32)

    # NCHW -> (N, T, C): tokens on rows (sublanes), channels on lanes, bf16 DMA.
    x_tok = x_nchw.reshape(N, C, T).transpose(0, 2, 1).astype(bf16)

    # pad batch to a multiple of the batch tile
    n_pad = ((N + b_tile - 1) // b_tile) * b_tile
    if n_pad != N:
        x_tok = jnp.pad(x_tok, ((0, n_pad - N), (0, 0), (0, 0)))
    G = n_pad // b_tile

    kernel = functools.partial(_attnpool_kernel, num_heads)
    rep2 = lambda b: (0, 0)
    rep3 = lambda b: (0, 0, 0)

    out = pl.pallas_call(
        kernel,
        out_shape=jax.ShapeDtypeStruct((G, b_tile, D), jnp.float32),
        grid=(G,),
        in_specs=[
            pl.BlockSpec((b_tile, T, C), lambda b: (b, 0, 0)),   # x tokens tile
            pl.BlockSpec((1, T, C), rep3),                       # pos[1:]
            pl.BlockSpec((1, C), rep2),                          # pos[0]
            pl.BlockSpec((C, C), rep2), pl.BlockSpec((1, C), rep2),       # Wq, bq
            pl.BlockSpec((C, 2 * C), rep2), pl.BlockSpec((1, 2 * C), rep2),  # Wkv, bkv
            pl.BlockSpec((C, D), rep2), pl.BlockSpec((1, D), rep2),       # Wc, bc
        ],
        out_specs=pl.BlockSpec((1, b_tile, D), lambda b: (b, 0, 0)),
        compiler_params=pltpu.CompilerParams(
            dimension_semantics=("parallel",),
            vmem_limit_bytes=64 * 1024 * 1024),
    )(x_tok, pos_x, pos0, wq_s, bq_s, wkv, bkv, wc_b, bc_f)
    return out.reshape(n_pad, D)[:N]


def reference_attention_pool_2d(x_nchw, params, num_heads):
    """Pure-JAX f32 replica of the PyTorch forward (for verification)."""
    N, C, H, W = x_nchw.shape
    HW = H * W
    pos, wq, bq, wk, bk, wv, bv, wc, bc = params
    hd = C // num_heads
    x = x_nchw.reshape(N, C, HW).transpose(2, 0, 1)                  # (HW, N, C)
    x = jnp.concatenate([x.mean(axis=0, keepdims=True), x], axis=0)  # (L, N, C)
    x = x + pos[:, None, :]
    q = (x[:1] @ wq + bq) * (hd ** -0.5)                             # (1, N, C)
    k = x @ wk + bk                                                  # (L, N, C)
    v = x @ wv + bv
    q = q.reshape(1, N, num_heads, hd)
    k = k.reshape(-1, N, num_heads, hd)
    v = v.reshape(-1, N, num_heads, hd)
    s = jnp.einsum('qnhd,lnhd->nhql', q, k)
    p = jax.nn.softmax(s, axis=-1)
    o = jnp.einsum('nhql,lnhd->qnhd', p, v).reshape(1, N, C)
    o = o @ wc + bc
    return o[0]


def init_params(key, spacial_dim, embed_dim, output_dim):
    """Deterministic synthetic parameters matching the module's shapes.

    Linear weights are stored pre-transposed (in, out) so the kernel does x @ W.
    Biases are stored as (1, dim) for TPU-friendly 2D layout.
    """
    L = spacial_dim ** 2 + 1
    ks = jax.random.split(key, 9)
    f32 = jnp.float32
    pos = jax.random.normal(ks[0], (L, embed_dim), f32) / math.sqrt(embed_dim)
    wq = jax.random.normal(ks[1], (embed_dim, embed_dim), f32) * 0.05
    wk = jax.random.normal(ks[2], (embed_dim, embed_dim), f32) * 0.05
    wv = jax.random.normal(ks[3], (embed_dim, embed_dim), f32) * 0.05
    wc = jax.random.normal(ks[4], (embed_dim, output_dim), f32) * 0.05
    bq = jax.random.normal(ks[5], (1, embed_dim), f32) * 0.01
    bk = jax.random.normal(ks[6], (1, embed_dim), f32) * 0.01
    bv = jax.random.normal(ks[7], (1, embed_dim), f32) * 0.01
    bc = jax.random.normal(ks[8], (1, output_dim), f32) * 0.01
    return (pos, wq, bq, wk, bk, wv, bv, wc, bc)


if __name__ == "__main__":
    # Small shapes consistent with the module:
    #   spacial_dim=4 -> H=W=4 (HW=16 tokens), embed_dim=32, num_heads=4,
    #   output_dim=64, batch=16 tiled as 2 grid steps of 8.
    N, C, H, W = 16, 32, 4, 4
    num_heads = 4
    output_dim = 64

    key = jax.random.PRNGKey(0)
    k_x, k_p = jax.random.split(key)
    x = jax.random.normal(k_x, (N, C, H, W), jnp.float32)
    params = init_params(k_p, spacial_dim=H, embed_dim=C, output_dim=output_dim)

    out = attention_pool_2d(x, params, num_heads, b_tile=8)
    out = jax.block_until_ready(out)

    ref = reference_attention_pool_2d(x, params, num_heads)
    assert out.shape == (N, output_dim), out.shape
    # bf16 matmul operands (f32 accumulation) -> loosened tolerance vs f32 ref.
    assert jnp.allclose(out, ref, rtol=2e-2, atol=2e-2), \
        float(jnp.max(jnp.abs(out - ref)))

    print("KERNEL_OK")
</pallas_src>

<mosaic_0001>
module attributes {stable_mosaic.version = 11 : i64} {
  func.func @_attnpool_kernel(%arg0: i32, %arg1: memref<8x16x32xbf16, #tpu.memory_space<vmem>>, %arg2: memref<1x16x32xbf16, #tpu.memory_space<vmem>>, %arg3: memref<1x32xf32, #tpu.memory_space<vmem>>, %arg4: memref<32x32xbf16, #tpu.memory_space<vmem>>, %arg5: memref<1x32xf32, #tpu.memory_space<vmem>>, %arg6: memref<32x64xbf16, #tpu.memory_space<vmem>>, %arg7: memref<1x64xf32, #tpu.memory_space<vmem>>, %arg8: memref<32x64xbf16, #tpu.memory_space<vmem>>, %arg9: memref<1x64xf32, #tpu.memory_space<vmem>>, %arg10: memref<1x8x64xf32, #tpu.memory_space<vmem>>) attributes {dimension_semantics = [#tpu.dimension_semantics<parallel>], iteration_bounds = array<i64: 2>, scalar_prefetch = 0 : i64, scratch_operands = 0 : i64, tpu.core_type = #tpu.core_type<tc>, window_params = [{transform_indices = @transform_0, window_bounds = array<i64: 8, 16, 32>}, {pipeline_mode = #tpu.pipeline_mode<synchronous>, transform_indices = @transform_1, window_bounds = array<i64: 1, 16, 32>}, {pipeline_mode = #tpu.pipeline_mode<synchronous>, transform_indices = @transform_2, window_bounds = array<i64: 1, 32>}, {pipeline_mode = #tpu.pipeline_mode<synchronous>, transform_indices = @transform_3, window_bounds = array<i64: 32, 32>}, {pipeline_mode = #tpu.pipeline_mode<synchronous>, transform_indices = @transform_4, window_bounds = array<i64: 1, 32>}, {pipeline_mode = #tpu.pipeline_mode<synchronous>, transform_indices = @transform_5, window_bounds = array<i64: 32, 64>}, {pipeline_mode = #tpu.pipeline_mode<synchronous>, transform_indices = @transform_6, window_bounds = array<i64: 1, 64>}, {pipeline_mode = #tpu.pipeline_mode<synchronous>, transform_indices = @transform_7, window_bounds = array<i64: 32, 64>}, {pipeline_mode = #tpu.pipeline_mode<synchronous>, transform_indices = @transform_8, window_bounds = array<i64: 1, 64>}, {transform_indices = @transform_9, window_bounds = array<i64: 1, 8, 64>}]} {
    %c0 = arith.constant 0 : index
    %c0_0 = arith.constant 0 : index
    %c0_1 = arith.constant 0 : index
    %0 = vector.load %arg1[%c0, %c0_0, %c0_1] : memref<8x16x32xbf16, #tpu.memory_space<vmem>>, vector<8x16x32xbf16>
    %1 = arith.extf %0 : vector<8x16x32xbf16> to vector<8x16x32xf32>
    %cst = arith.constant dense<0.000000e+00> : vector<8x32xf32>
    %2 = vector.multi_reduction <add>, %1, %cst [1] : vector<8x16x32xf32> to vector<8x32xf32>
    %cst_2 = arith.constant 1.600000e+01 : f32
    %3 = vector.broadcast %cst_2 : f32 to vector<8x32xf32>
    %4 = arith.divf %2, %3 : vector<8x32xf32>
    %c0_3 = arith.constant 0 : index
    %c0_4 = arith.constant 0 : index
    %5 = vector.load %arg3[%c0_3, %c0_4] : memref<1x32xf32, #tpu.memory_space<vmem>>, vector<1x32xf32>
    %6 = vector.broadcast %5 : vector<1x32xf32> to vector<8x32xf32>
    %7 = arith.addf %4, %6 : vector<8x32xf32>
    %8 = arith.truncf %7 : vector<8x32xf32> to vector<8x32xbf16>
    %c0_5 = arith.constant 0 : index
    %c0_6 = arith.constant 0 : index
    %c0_7 = arith.constant 0 : index
    %9 = vector.load %arg2[%c0_5, %c0_6, %c0_7] : memref<1x16x32xbf16, #tpu.memory_space<vmem>>, vector<1x16x32xbf16>
    %10 = vector.broadcast %9 : vector<1x16x32xbf16> to vector<8x16x32xbf16>
    %11 = arith.addf %0, %10 : vector<8x16x32xbf16>
    %12 = vector.shape_cast %11 : vector<8x16x32xbf16> to vector<128x32xbf16>
    %c0_8 = arith.constant 0 : index
    %c0_9 = arith.constant 0 : index
    %13 = vector.load %arg6[%c0_8, %c0_9] : memref<32x64xbf16, #tpu.memory_space<vmem>>, vector<32x64xbf16>
    %cst_10 = arith.constant dense<0.000000e+00> : vector<128x64xf32>
    %14 = tpu.matmul %12, %13, %cst_10 {dimension_numbers = #tpu.dot_dimension_numbers<[1], [0], [0], [1], [0, 0, 1, 1], [], []>} : vector<128x32xbf16>, vector<32x64xbf16>, vector<128x64xf32> -> vector<128x64xf32>
    %c0_11 = arith.constant 0 : index
    %c0_12 = arith.constant 0 : index
    %15 = vector.load %arg7[%c0_11, %c0_12] : memref<1x64xf32, #tpu.memory_space<vmem>>, vector<1x64xf32>
    %16 = vector.broadcast %15 : vector<1x64xf32> to vector<128x64xf32>
    %17 = arith.addf %14, %16 : vector<128x64xf32>
    %c0_13 = arith.constant 0 : index
    %c0_14 = arith.constant 0 : index
    %18 = vector.load %arg4[%c0_13, %c0_14] : memref<32x32xbf16, #tpu.memory_space<vmem>>, vector<32x32xbf16>
    %cst_15 = arith.constant dense<0.000000e+00> : vector<8x32xf32>
    %19 = tpu.matmul %8, %18, %cst_15 {dimension_numbers = #tpu.dot_dimension_numbers<[1], [0], [0], [1], [0, 0, 1, 1], [], []>} : vector<8x32xbf16>, vector<32x32xbf16>, vector<8x32xf32> -> vector<8x32xf32>
    %c0_16 = arith.constant 0 : index
    %c0_17 = arith.constant 0 : index
    %20 = vector.load %arg5[%c0_16, %c0_17] : memref<1x32xf32, #tpu.memory_space<vmem>>, vector<1x32xf32>
    %21 = vector.broadcast %20 : vector<1x32xf32> to vector<8x32xf32>
    %22 = arith.addf %19, %21 : vector<8x32xf32>
    %c0_18 = arith.constant 0 : index
    %c0_19 = arith.constant 0 : index
    %23 = vector.load %arg6[%c0_18, %c0_19] : memref<32x64xbf16, #tpu.memory_space<vmem>>, vector<32x64xbf16>
    %cst_20 = arith.constant dense<0.000000e+00> : vector<8x64xf32>
    %24 = tpu.matmul %8, %23, %cst_20 {dimension_numbers = #tpu.dot_dimension_numbers<[1], [0], [0], [1], [0, 0, 1, 1], [], []>} : vector<8x32xbf16>, vector<32x64xbf16>, vector<8x64xf32> -> vector<8x64xf32>
    %c0_21 = arith.constant 0 : index
    %c0_22 = arith.constant 0 : index
    %25 = vector.load %arg7[%c0_21, %c0_22] : memref<1x64xf32, #tpu.memory_space<vmem>>, vector<1x64xf32>
    %26 = vector.broadcast %25 : vector<1x64xf32> to vector<8x64xf32>
    %27 = arith.addf %24, %26 : vector<8x64xf32>
    %28 = vector.extract_strided_slice %17 {offsets = [0, 0], sizes = [128, 32], strides = [1, 1]} : vector<128x64xf32> to vector<128x32xf32>
    %29 = vector.extract_strided_slice %17 {offsets = [0, 32], sizes = [128, 32], strides = [1, 1]} : vector<128x64xf32> to vector<128x32xf32>
    %30 = vector.extract_strided_slice %27 {offsets = [0, 0], sizes = [8, 32], strides = [1, 1]} : vector<8x64xf32> to vector<8x32xf32>
    %31 = vector.extract_strided_slice %27 {offsets = [0, 32], sizes = [8, 32], strides = [1, 1]} : vector<8x64xf32> to vector<8x32xf32>
    %32 = tpu.iota {dimensions = array<i32: 0>} : vector<32x4xi32>
    %33 = tpu.iota {dimensions = array<i32: 1>} : vector<32x4xi32>
    %c8_i32 = arith.constant 8 : i32
    %34 = vector.broadcast %c8_i32 : i32 to vector<32x4xi32>
    %35 = arith.muli %33, %34 : vector<32x4xi32>
    %36 = arith.cmpi sge, %32, %35 : vector<32x4xi32>
    %c1_i32 = arith.constant 1 : i32
    %37 = vector.broadcast %c1_i32 : i32 to vector<32x4xi32>
    %38 = arith.addi %33, %37 : vector<32x4xi32>
    %c8_i32_23 = arith.constant 8 : i32
    %39 = vector.broadcast %c8_i32_23 : i32 to vector<32x4xi32>
    %40 = arith.muli %38, %39 : vector<32x4xi32>
    %41 = arith.cmpi slt, %32, %40 : vector<32x4xi32>
    %42 = arith.andi %36, %41 : vector<32x4xi1>
    %43 = arith.extui %42 : vector<32x4xi1> to vector<32x4xi32>
    %44 = arith.sitofp %43 : vector<32x4xi32> to vector<32x4xf32>
    %45 = tpu.iota {dimensions = array<i32: 0>} : vector<4x32xi32>
    %46 = tpu.iota {dimensions = array<i32: 1>} : vector<4x32xi32>
    %c8_i32_24 = arith.constant 8 : i32
    %47 = vector.broadcast %c8_i32_24 : i32 to vector<4x32xi32>
    %48 = arith.muli %45, %47 : vector<4x32xi32>
    %49 = arith.cmpi sge, %46, %48 : vector<4x32xi32>
    %c1_i32_25 = arith.constant 1 : i32
    %50 = vector.broadcast %c1_i32_25 : i32 to vector<4x32xi32>
    %51 = arith.addi %45, %50 : vector<4x32xi32>
    %c8_i32_26 = arith.constant 8 : i32
    %52 = vector.broadcast %c8_i32_26 : i32 to vector<4x32xi32>
    %53 = arith.muli %51, %52 : vector<4x32xi32>
    %54 = arith.cmpi slt, %46, %53 : vector<4x32xi32>
    %55 = arith.andi %49, %54 : vector<4x32xi1>
    %56 = arith.extui %55 : vector<4x32xi1> to vector<4x32xi32>
    %57 = arith.sitofp %56 : vector<4x32xi32> to vector<4x32xf32>
    %58 = vector.shape_cast %22 : vector<8x32xf32> to vector<8x1x32xf32>
    %59 = vector.shape_cast %58 : vector<8x1x32xf32> to vector<8x1x32xf32>
    %60 = vector.broadcast %59 : vector<8x1x32xf32> to vector<8x16x32xf32>
    %61 = vector.shape_cast %60 : vector<8x16x32xf32> to vector<128x32xf32>
    %62 = arith.mulf %61, %28 : vector<128x32xf32>
    %cst_27 = arith.constant dense<0.000000e+00> : vector<128x4xf32>
    %63 = tpu.matmul %62, %44, %cst_27 {dimension_numbers = #tpu.dot_dimension_numbers<[1], [0], [0], [1], [0, 0, 1, 1], [], []>} : vector<128x32xf32>, vector<32x4xf32>, vector<128x4xf32> -> vector<128x4xf32>
    %64 = arith.mulf %22, %30 : vector<8x32xf32>
    %cst_28 = arith.constant dense<0.000000e+00> : vector<8x4xf32>
    %65 = tpu.matmul %64, %44, %cst_28 {dimension_numbers = #tpu.dot_dimension_numbers<[1], [0], [0], [1], [0, 0, 1, 1], [], []>} : vector<8x32xf32>, vector<32x4xf32>, vector<8x4xf32> -> vector<8x4xf32>
    %66 = vector.shape_cast %63 : vector<128x4xf32> to vector<8x16x4xf32>
    %cst_29 = arith.constant dense<0xFF800000> : vector<8x4xf32>
    %67 = vector.multi_reduction <maximumf>, %66, %cst_29 [1] : vector<8x16x4xf32> to vector<8x4xf32>
    %68 = arith.maximumf %65, %67 : vector<8x4xf32>
    %69 = arith.subf %65, %68 : vector<8x4xf32>
    %70 = math.exp %69 : vector<8x4xf32>
    %71 = vector.shape_cast %68 : vector<8x4xf32> to vector<8x1x4xf32>
    %72 = vector.broadcast %71 : vector<8x1x4xf32> to vector<8x16x4xf32>
    %73 = arith.subf %66, %72 : vector<8x16x4xf32>
    %74 = math.exp %73 : vector<8x16x4xf32>
    %cst_30 = arith.constant dense<0.000000e+00> : vector<8x4xf32>
    %75 = vector.multi_reduction <add>, %74, %cst_30 [1] : vector<8x16x4xf32> to vector<8x4xf32>
    %76 = arith.addf %70, %75 : vector<8x4xf32>
    %77 = tpu.reciprocal %76 {approx = true} : vector<8x4xf32> -> vector<8x4xf32>
    %78 = arith.mulf %70, %77 : vector<8x4xf32>
    %79 = vector.shape_cast %77 : vector<8x4xf32> to vector<8x1x4xf32>
    %80 = vector.broadcast %79 : vector<8x1x4xf32> to vector<8x16x4xf32>
    %81 = arith.mulf %74, %80 : vector<8x16x4xf32>
    %82 = vector.shape_cast %81 : vector<8x16x4xf32> to vector<128x4xf32>
    %cst_31 = arith.constant dense<0.000000e+00> : vector<8x32xf32>
    %83 = tpu.matmul %78, %57, %cst_31 {dimension_numbers = #tpu.dot_dimension_numbers<[1], [0], [0], [1], [0, 0, 1, 1], [], []>} : vector<8x4xf32>, vector<4x32xf32>, vector<8x32xf32> -> vector<8x32xf32>
    %cst_32 = arith.constant dense<0.000000e+00> : vector<128x32xf32>
    %84 = tpu.matmul %82, %57, %cst_32 {dimension_numbers = #tpu.dot_dimension_numbers<[1], [0], [0], [1], [0, 0, 1, 1], [], []>} : vector<128x4xf32>, vector<4x32xf32>, vector<128x32xf32> -> vector<128x32xf32>
    %85 = arith.mulf %83, %31 : vector<8x32xf32>
    %86 = arith.mulf %84, %29 : vector<128x32xf32>
    %87 = vector.shape_cast %86 : vector<128x32xf32> to vector<8x16x32xf32>
    %cst_33 = arith.constant dense<0.000000e+00> : vector<8x32xf32>
    %88 = vector.multi_reduction <add>, %87, %cst_33 [1] : vector<8x16x32xf32> to vector<8x32xf32>
    %89 = arith.addf %85, %88 : vector<8x32xf32>
    %90 = arith.truncf %89 : vector<8x32xf32> to vector<8x32xbf16>
    %c0_34 = arith.constant 0 : index
    %c0_35 = arith.constant 0 : index
    %91 = vector.load %arg8[%c0_34, %c0_35] : memref<32x64xbf16, #tpu.memory_space<vmem>>, vector<32x64xbf16>
    %cst_36 = arith.constant dense<0.000000e+00> : vector<8x64xf32>
    %92 = tpu.matmul %90, %91, %cst_36 {dimension_numbers = #tpu.dot_dimension_numbers<[1], [0], [0], [1], [0, 0, 1, 1], [], []>} : vector<8x32xbf16>, vector<32x64xbf16>, vector<8x64xf32> -> vector<8x64xf32>
    %c0_37 = arith.constant 0 : index
    %c0_38 = arith.constant 0 : index
    %93 = vector.load %arg9[%c0_37, %c0_38] : memref<1x64xf32, #tpu.memory_space<vmem>>, vector<1x64xf32>
    %94 = vector.broadcast %93 : vector<1x64xf32> to vector<8x64xf32>
    %95 = arith.addf %92, %94 : vector<8x64xf32>
    %c0_39 = arith.constant 0 : index
    %c0_40 = arith.constant 0 : index
    %c0_41 = arith.constant 0 : index
    %96 = vector.load %arg10[%c0_39, %c0_40, %c0_41] : memref<1x8x64xf32, #tpu.memory_space<vmem>>, vector<1x8x64xf32>
    %97 = vector.shape_cast %96 : vector<1x8x64xf32> to vector<8x64xf32>
    %98 = vector.shape_cast %95 : vector<8x64xf32> to vector<1x8x64xf32>
    tpu.vector_store %arg10[%c0_39, %c0_40, %c0_41], %98 {strides = array<i32>} : memref<1x8x64xf32, #tpu.memory_space<vmem>>, vector<1x8x64xf32>,
    return
  }
  func.func @transform_0(%arg0: i32) -> (i32, i32, i32) {
    %c0_i32 = arith.constant 0 : i32
    %c0_i32_0 = arith.constant 0 : i32
    %c0_i32_1 = arith.constant 0 : i32
    return %arg0, %c0_i32, %c0_i32_0 : i32, i32, i32
  }
  func.func @transform_1(%arg0: i32) -> (i32, i32, i32) {
    %c0_i32 = arith.constant 0 : i32
    %c0_i32_0 = arith.constant 0 : i32
    %c0_i32_1 = arith.constant 0 : i32
    %c0_i32_2 = arith.constant 0 : i32
    return %c0_i32, %c0_i32_0, %c0_i32_1 : i32, i32, i32
  }
  func.func @transform_2(%arg0: i32) -> (i32, i32) {
    %c0_i32 = arith.constant 0 : i32
    %c0_i32_0 = arith.constant 0 : i32
    %c0_i32_1 = arith.constant 0 : i32
    return %c0_i32, %c0_i32_0 : i32, i32
  }
  func.func @transform_3(%arg0: i32) -> (i32, i32) {
    %c0_i32 = arith.constant 0 : i32
    %c0_i32_0 = arith.constant 0 : i32
    %c0_i32_1 = arith.constant 0 : i32
    return %c0_i32, %c0_i32_0 : i32, i32
  }
  func.func @transform_4(%arg0: i32) -> (i32, i32) {
    %c0_i32 = arith.constant 0 : i32
    %c0_i32_0 = arith.constant 0 : i32
    %c0_i32_1 = arith.constant 0 : i32
    return %c0_i32, %c0_i32_0 : i32, i32
  }
  func.func @transform_5(%arg0: i32) -> (i32, i32) {
    %c0_i32 = arith.constant 0 : i32
    %c0_i32_0 = arith.constant 0 : i32
    %c0_i32_1 = arith.constant 0 : i32
    return %c0_i32, %c0_i32_0 : i32, i32
  }
  func.func @transform_6(%arg0: i32) -> (i32, i32) {
    %c0_i32 = arith.constant 0 : i32
    %c0_i32_0 = arith.constant 0 : i32
    %c0_i32_1 = arith.constant 0 : i32
    return %c0_i32, %c0_i32_0 : i32, i32
  }
  func.func @transform_7(%arg0: i32) -> (i32, i32) {
    %c0_i32 = arith.constant 0 : i32
    %c0_i32_0 = arith.constant 0 : i32
    %c0_i32_1 = arith.constant 0 : i32
    return %c0_i32, %c0_i32_0 : i32, i32
  }
  func.func @transform_8(%arg0: i32) -> (i32, i32) {
    %c0_i32 = arith.constant 0 : i32
    %c0_i32_0 = arith.constant 0 : i32
    %c0_i32_1 = arith.constant 0 : i32
    return %c0_i32, %c0_i32_0 : i32, i32
  }
  func.func @transform_9(%arg0: i32) -> (i32, i32, i32) {
    %c0_i32 = arith.constant 0 : i32
    %c0_i32_0 = arith.constant 0 : i32
    %c0_i32_1 = arith.constant 0 : i32
    return %arg0, %c0_i32, %c0_i32_0 : i32, i32, i32
  }
}

</mosaic_0001>

<bundles_post_ra>
// kernel: tpu_custom_call.1
= control target key start
LH: loop header
LB: loop body
LE: loop exit
PB: predicated region body
PF: predicated region fallthrough
CT: control target
= control target key end

     0   :  { %s3830_s0 = inlined_call_operand.hbm [shape: bf16[16,16,32], index: 0, kind: input, shape index: {}]   ;;  %s3831_s1 = inlined_call_operand.hbm [shape: bf16[1,16,32], index: 1, kind: input, shape index: {}]   ;;  %s3832_s2 = inlined_call_operand.vmem [shape: f32[1,32], index: 2, kind: input, shape index: {}]   ;;  %s3833_s3 = inlined_call_operand.hbm [shape: bf16[32,32], index: 3, kind: input, shape index: {}]   ;;  %s3834_s4 = inlined_call_operand.vmem [shape: f32[1,32], index: 4, kind: input, shape index: {}]   ;;  %s3835_s5 = inlined_call_operand.hbm [shape: bf16[32,64], index: 5, kind: input, shape index: {}]   ;;  %s3836_s6 = inlined_call_operand.vmem [shape: f32[1,64], index: 6, kind: input, shape index: {}]   ;;  %s3837_s7 = inlined_call_operand.hbm [shape: bf16[32,64], index: 7, kind: input, shape index: {}]   ;;  %s3838_s8 = inlined_call_operand.vmem [shape: f32[1,64], index: 8, kind: input, shape index: {}]   ;;  %s3839_s9 = inlined_call_operand.hbm [shape: f32[2,8,64], index: 9, kind: output, shape index: {}]  }
   0x1   :  { %3849 = sst [smem:[#allocation16_spill]] %s3831_s1 }
   0x2   :  { %3850 = sst [smem:[#allocation17_spill]] %s3833_s3 }
   0x3   :  { %3851 = sst [smem:[#allocation18_spill]] %s3835_s5 }
   0x4   :  { %14 = vsyncpa [#allocation3], 0 }
   0x5   :  { %16 = vsyncpa [#allocation3 + $0x1], 0 }
   0x6   :  { %17 = vsyncpa [#allocation6], 0 }
   0x7   :  { %18 = vsyncpa [#allocation9], 0 }
   0x8   :  { %19 = vsyncpa [#allocation4], 0 }
   0x9   :  { %21 = vsyncpa [#allocation4 + $0x1], 0  ;;  %s3061_s30 = smov 0   ;;  %s3063_s10 = smov 0  }
   0xa   :  { %s3065_s11 = smov 0   ;;  %s3067_s12 = smov 0  }
   0xb LB: > { %s3082_s13 = sadd.s32 4294967295, %s2996_s12   ;;  %s2369_s14 = sadd.s32 4294967294, %s2996_s12   ;;  %s2996_s12 = sphi %s3067_s12, %s3884_s12   ;;  %s2992_s11 = sphi %s3065_s11, %s3883_s11   ;;  %s2988_s10 = sphi %s3063_s10, %s3882_s10   ;;  %s2984_s30 = sphi %s3061_s30, %s3881_s30  }
   0xc   : > { %p47_p0 = scmp.ne.s32.totalorder %s2988_s10, %s2984_s30  ;;  %p3840_p1 = scmp.eq.s32.totalorder %s3082_s13, 0 }
   0xd   : > { %p239_p2 = scmp.eq.s32.totalorder %s3082_s13, 1  ;;  %p245_p3 = scmp.eq.s32.totalorder %s2369_s14, 1 }
   0xe   : > { %p3091_p4 = por %p3840_p1, %p47_p0  ;;  %p2370_p5 = scmp.ge.s32.totalorder %s2996_s12, 1 }
   0xf   : > { %p3096_p6 = por %p245_p3, %p47_p0  ;;  %p252_p7 = scmp.lt.s32.totalorder %s2996_s12, 3 }
  0x10   : > { %s3852_s15 = scalar_select %p3091_p4, 1, 0 }
  0x11   : > { %s3853_s16 = scalar_select %p3096_p6, 1, 0 }
  0x12   : > { %p3101_p8 = pnand %p2370_p5, %p252_p7  ;;  %s2998_s18 = smov [#allocation5]  }
  0x13   : > { %s264_s19 = sshll.u32 %s2998_s18, 4  ;;  %s2999_s21 = smov [#allocation8]   ;;  %s265_s19 = int_to_ptr.vmem [resolvable:$true] %s264_s19 }
  0x14   : > { %s3854_s17 = scalar_select %p3101_p8, 1, 0 }
  0x15   : > { %p2676_p9 = pneg %p3101_p8  ;;  %s296_s22 = sshll.u32 %s2999_s21, 4  ;;  %s297_s22 = int_to_ptr.vmem [resolvable:$true] %s296_s22 }
  0x16   : > { %s3000_s23 = smov [#allocation7]   ;;  %s2803_s25 = scalar_lea.vmem %s265_s19, 128 }
  0x17   : > { %p3110_p11 = pnand %p2676_p9, %p3840_p1  ;;  %s280_s24 = sshll.u32 %s3000_s23, 4  ;;  %s281_s24 = int_to_ptr.vmem [resolvable:$true] %s280_s24 }
  0x18   : > { %p2804_p13 = scmp.ne.s32.totalorder %s265_s19, %s2803_s25  ;;  %p2811_p5 = scmp.lt.s32.totalorder %s265_s19, %s265_s19 }
  0x19   : > { %p2794_p12 = pneg %p3110_p11  ;;  %p2812_p7 = scmp.lt.s32.totalorder %s2803_s25, %s2803_s25 }
  0x1b   : > { %p2806_p0 = pnand %p2804_p13, %p2794_p12  ;;  %p2813_p9 = por %p2812_p7, %p2811_p5 }
  0x1d   : > { %p2807_p3 = pneg %p2806_p0 }
  0x1f   : > { %p2814_p10 = pnand %p2813_p9, %p2807_p3 }
  0x21   : > { %2817 = shalt.err (!%p2814_p10)
}
  0x22   : > { %s3841_s26 = smov 64   ;;  %s3842_s27 = smov 4  }
  0x23   : > { %s3856_s1 = sld [smem:[#allocation16_spill]]  ;;  %s2829_s14 = scalar_lea.vmem %s297_s22, 256 }
  0x24   : > { %p2830_p13 = scmp.ne.s32.totalorder %s297_s22, %s2829_s14  ;;  %p2837_p3 = scmp.lt.s32.totalorder %s297_s22, %s297_s22 }
  0x25   : > { %p2838_p10 = scmp.lt.s32.totalorder %s2829_s14, %s2829_s14 }
  0x26   : > { %p2832_p0 = pnand %p2830_p13, %p2794_p12 }
  0x27   : > { %p2839_p7 = por %p2838_p10, %p2837_p3 }
  0x28   : > { %p2833_p5 = pneg %p2832_p0 }
  0x29   : > { %2679 = dma.hbm_to_vmem [thread:$0]  (!%p3110_p11), %s3856_s1, 128, %s265_s19, [#allocation6], %s3841_s26, %s3841_s26, %s3842_s27  }
  0x2a   : > { %p2840_p9 = pnand %p2839_p7, %p2833_p5 }
  0x2c   : > { %2843 = shalt.err (!%p2840_p9)
}
  0x2d   : > { %s3857_s5 = sld [smem:[#allocation18_spill]]  ;;  %s2855_s19 = scalar_lea.vmem %s281_s24, 256 }
  0x2e   : > { %p2856_p1 = scmp.ne.s32.totalorder %s281_s24, %s2855_s19  ;;  %p2863_p3 = scmp.lt.s32.totalorder %s281_s24, %s281_s24 }
  0x2f   : > { %p2864_p5 = scmp.lt.s32.totalorder %s2855_s19, %s2855_s19 }
  0x30   : > { %p2858_p13 = pnand %p2856_p1, %p2794_p12 }
  0x31   : > { %p2865_p10 = por %p2864_p5, %p2863_p3 }
  0x32   : > { %p2859_p0 = pneg %p2858_p13 }
  0x33   : > { %2685 = dma.hbm_to_vmem [thread:$0]  (!%p3110_p11), %s3857_s5, 256, %s297_s22, [#allocation9], %s3841_s26, %s3841_s26, %s3842_s27  }
  0x34   : > { %p2866_p7 = pnand %p2865_p10, %p2859_p0 }
  0x36   : > { %2869 = shalt.err (!%p2866_p7)
}
  0x37   : > { %s3858_s3 = sld [smem:[#allocation17_spill]]  ;;  %s3003_s22 = smov [#allocation10]  }
  0x38   : > { %s312_s28 = sshll.u32 %s3003_s22, 4  ;;  %s313_s28 = int_to_ptr.vmem [resolvable:$true] %s312_s28 }
  0x39   : > { %s2881_s29 = scalar_lea.vmem %s313_s28, 256  ;;  %p2889_p0 = scmp.lt.s32.totalorder %s313_s28, %s313_s28 }
  0x3a   : > { %p2882_p1 = scmp.ne.s32.totalorder %s313_s28, %s2881_s29  ;;  %p2890_p3 = scmp.lt.s32.totalorder %s2881_s29, %s2881_s29 }
  0x3c   : > { %p2884_p9 = pnand %p2882_p1, %p2794_p12  ;;  %p2891_p5 = por %p2890_p3, %p2889_p0 }
  0x3d   : > { %2682 = dma.hbm_to_vmem [thread:$0]  (!%p3110_p11), %s3858_s3, 256, %s281_s24, [#allocation6], %s3841_s26, %s3841_s26, %s3842_s27  }
  0x3e   : > { %p2885_p13 = pneg %p2884_p9 }
  0x40   : > { %p2892_p10 = pnand %p2891_p5, %p2885_p13 }
  0x42   : > { %2895 = shalt.err (!%p2892_p10)
}
  0x43   : > { %2688 = dma.hbm_to_vmem [thread:$0]  (!%p3110_p11), %s3837_s7, 256, %s313_s28, [#allocation9], %s3841_s26, %s3841_s26, %s3842_s27  }
  0x44   : > { %s3161_s18 = sadd.s32 1, %s2996_s12   ;;  %s34_s20 = sadd.s32 1, %s2992_s11 }
  0x45   : > { %s31_s21 = ssub.s32 %s2996_s12, %s3161_s18  ;;  %p41_p12 = scmp.ne.s32.totalorder %s2992_s11, %s2988_s10 }
  0x46   : > { %p32_p7 = scmp.eq.s32.totalorder %s31_s21, 0  ;;  %p42_p1 = scmp.eq.s32.totalorder %s2996_s12, 0 }
  0x47   : > { %p3171_p9 = por %p239_p2, %p41_p12  ;;  %p2701_p13 = scmp.lt.s32.totalorder %s2996_s12, 2 }
  0x48   : > { %s3177_s23 = scalar_select %p32_p7, %s2992_s11, %s34_s20  }
  0x49   : > { %s3859_s19 = scalar_select %p3171_p9, 1, 0 }
  0x4a   : > { %p43_p0 = por %p42_p1, %p41_p12  ;;  %s329_s25 = sand.u32 1, %s2992_s11  }
  0x4b   : > { %s2376_s22 = sshll.u32 %s329_s25, 6  ;;  %s2470_s28 = sshll.u32 %s2996_s12, 10 }
  0x4c   : > { %s3184_s14 = scalar_lea.hbm %s3830_s0, %s2470_s28  ;;  %s333_s21 = scalar_lea.vmem [#allocation2], %s2376_s22 }
  0x4d   : > { %s341_s26 = sshll.u32 %s333_s21, 4  ;;  %p3188_p2 = pnand %p2701_p13, %p43_p0  ;;  %s3186_s26 = int_to_ptr.vmem [resolvable:$true] %s341_s26 }
  0x4e   : > { %s3192_s20 = scalar_lea.sflag [#allocation3], %s329_s25  ;;  %s2896_s1 = scalar_lea.hbm %s3184_s14, 1024 }
  0x4f   : > { %p2897_p11 = scmp.ne.s32.totalorder %s3184_s14, %s2896_s1  ;;  %p2898_p3 = pneg %p3188_p2 }
  0x50   : > { %s2901_s22 = scalar_lea.hbm %s3830_s0, 2048  ;;  %p2902_p12 = scmp.lt.s32.totalorder %s3184_s14, %s3830_s0 }
  0x51   : > { %p2899_p5 = pnand %p2898_p3, %p2897_p11  ;;  %p2903_p7 = scmp.lt.s32.totalorder %s2901_s22, %s2896_s1 }
  0x53   : > { %p2900_p10 = pneg %p2899_p5  ;;  %p2904_p1 = por %p2903_p7, %p2902_p12 }
  0x55   : > { %p2905_p13 = pnand %p2904_p1, %p2900_p10 }
  0x57   : > { %2908 = shalt.err (!%p2905_p13)
}
  0x58   : > { %s2909_s25 = scalar_lea.vmem %s3186_s26, 1024  ;;  %s3004_s3 = smov [#allocation2]  }
  0x59   : > { %p2910_p0 = scmp.ne.s32.totalorder %s3186_s26, %s2909_s25  ;;  %s2914_s5 = sshll.u32 %s3004_s3, 4  ;;  %s2915_s5 = int_to_ptr.vmem [resolvable:$false] %s2914_s5 }
  0x5a   : > { %s2916_s28 = scalar_lea.vmem %s2915_s5, 2048  ;;  %p2917_p5 = scmp.lt.s32.totalorder %s3186_s26, %s2915_s5 }
  0x5b   : > { %p2912_p6 = pnand %p2910_p0, %p2898_p3  ;;  %p2918_p9 = scmp.lt.s32.totalorder %s2916_s28, %s2909_s25 }
  0x5d   : > { %p2913_p11 = pneg %p2912_p6  ;;  %p2919_p4 = por %p2918_p9, %p2917_p5 }
  0x5f   : > { %p2920_p8 = pnand %p2919_p4, %p2913_p11 }
  0x61   : > { %2923 = shalt.err (!%p2920_p8)
}
  0x62   : > { %s3861_s1 = smov 4   ;;  %s3862_s29 = smov 64  }
  0x63   : > { %2692 = dma.hbm_to_vmem [thread:$0]  (!%p3188_p2), %s3184_s14, 1024, %s3186_s26, %s3192_s20, %s3862_s29, %s3862_s29, %s3861_s1  }
  0x64   : > { %p3863_p6 = scmp.ne.s32.totalorder %s3854_s17, 0 }
  0x65   : > { %s3219_s3 = sand.u32 (!%p3863_p6), 1, %s2988_s10   ;;  %p3864_p4 = scmp.ne.s32.totalorder (!%p3863_p6), %s3852_s15, 0 }
  0x66   : > { %353 = sbr.rel (%p3863_p6) target bundleno = 1151 (0x47f), region = 56  ;;  %s2381_s5 = sshll.u32 (!%p3863_p6), %s3219_s3, 6 }
  0x67   : > { %s356_s22 = scalar_lea.sflag (!%p3863_p6), [#allocation3], %s3219_s3  ;;  %s3223_s24 = scalar_lea.vmem (!%p3863_p6), [#allocation2], %s2381_s5 }
  0x6b   : > { %2967 = dma.done.wait (%p3864_p4), %s356_s22, 1024  }
  0x6c   : > { %2969 = vsyncadd (%p3864_p4), %s356_s22, 4294966272  ;;  %p3865_p8 = scmp.eq.s32.totalorder %s3082_s13, 0 }
  0x6e   : > { %2971 = dma.done.wait (%p3865_p8), [#allocation6], 384   ;;  %p3866_p9 = pmov %p3865_p8 }
  0x6f   : > { %p3867_p2 = pmov %p3865_p8 }
  0x70   : > { %2973 = vsyncadd (%p3866_p9), [#allocation6], 4294966912 }
  0x71   : > { %2975 = dma.done.wait (%p3867_p2), [#allocation9], 512   ;;  %p3868_p3 = pmov %p3867_p2 }
  0x72   : > { %v3237_v0 = vld [vmem:[#allocation8 + $0x8] sm:$0xff]   ;;  %v3239_v1 = vld [vmem:[#allocation8] sm:$0xff]   ;;  %vm444_vm0 = vcmask 261120   ;;  %v414_v8 = vld [vmem:[%s3223_s24 + $0x8] sm:$0xf]  ;;  %v3005_v35 = vmov 0.0  }
  0x73   : > { %2977 = vsyncadd (%p3868_p3), [#allocation9], 4294966784  ;;  %2534 = vmatprep.subr.bf16.mxu0 %v3237_v0  ;;  %2652 = vmatprep.subr.bf16.mxu1 %v3237_v0  ;;  %v412_v2 = vld [vmem:[%s3223_s24] sm:$0xf]  ;;  %v413_v3 = vld [vmem:[%s3223_s24 + $0x4] sm:$0xf]  ;;  %v430_v12 = vunpack.c.l.bf16 %v414_v8 }
  0x74   : > { %2535 = vmatpush3.bf16.msra.mxu0 %v3237_v0  ;;  %2654 = vmatpush3.bf16.msra.mxu1 %v3237_v0  ;;  %v428_v4 = vunpack.c.l.bf16 %v412_v2  ;;  %v429_v5 = vunpack.c.l.bf16 %v413_v3  ;;  %v3247_v6 = vld [vmem:[#allocation5] sm:$0xf]  ;;  %v3249_v7 = vld [vmem:[#allocation5 + $0x4] sm:$0xf]  ;;  %v415_v11 = vld [vmem:[%s3223_s24 + $0xc] sm:$0xf] }
  0x75   : > { %2536 = vmatprep.subr.bf16.mxu0 %v3239_v1  ;;  %2653 = vmatprep.subr.bf16.mxu1 %v3239_v1  ;;  %v551_v9 = vadd.bf16 %v3247_v6, %v412_v2  ;;  %v552_v10 = vadd.bf16 %v3249_v7, %v413_v3  ;;  %v553_v13 = vadd.bf16 %v3247_v6, %v414_v8  ;;  %v424_v14 = vld [vmem:[%s3223_s24 + $0x30] sm:$0xf]  ;;  %v425_v15 = vld [vmem:[%s3223_s24 + $0x34] sm:$0xf]  ;;  %v431_v18 = vunpack.c.l.bf16 %v415_v11  ;;  %v426_v24 = vld [vmem:[%s3223_s24 + $0x38] sm:$0xf] }
  0x76   : > { %v445_v16 = vsel %vm444_vm0, %v428_v4, 0.0  ;;  %v446_v17 = vsel %vm444_vm0, %v429_v5, 0.0  ;;  %v554_v19 = vadd.bf16 %v3249_v7, %v415_v11  ;;  %v454_v22 = vsel %vm444_vm0, %v430_v12, 0.0  ;;  %v427_v25 = vld [vmem:[%s3223_s24 + $0x3c] sm:$0xf]  ;;  %v2752_v47 = vld [vmem:[#allocation7 + $0x8] sm:$0xff]  }
  0x77   : > { %v447_v20 = vadd.f32 %v446_v17, %v445_v16  ;;  %v2389_v21 = vcombine.low %v551_v9, %v552_v10  ;;  %v440_v23 = vunpack.c.l.bf16 %v424_v14  ;;  %v455_v26 = vsel %vm444_vm0, %v431_v18, 0.0  ;;  %v416_v34 = vld [vmem:[%s3223_s24 + $0x10] sm:$0xf]  ;;  %v417_v40 = vld [vmem:[%s3223_s24 + $0x14] sm:$0xf]  ;;  %v2753_v10 = vld [vmem:[#allocation7] sm:$0xff]  }
  0x78   : > { %2537 = vmatpush3.bf16.msra.mxu0 %v3239_v1  ;;  %2655 = vmatpush3.bf16.msra.mxu1 %v3239_v1  ;;  %v2390_v27 = vcombine.low %v553_v13, %v554_v19  ;;  %v441_v28 = vunpack.c.l.bf16 %v425_v15  ;;  %v563_v29 = vadd.bf16 %v3247_v6, %v424_v14  ;;  %v456_v31 = vadd.f32 %v455_v26, %v454_v22  ;;  %v418_v45 = vld [vmem:[%s3223_s24 + $0x18] sm:$0xf]  ;;  %v419_v46 = vld [vmem:[%s3223_s24 + $0x1c] sm:$0xf]  ;;  %v420_v17 = vld [vmem:[%s3223_s24 + $0x20] sm:$0xf] }
  0x79   : > { %v448_v30 = vrot.slane %v447_v20, 4  ;;  %2538 = vmatprep.mubr.msk.bf16.mxu0 %vm444_vm0, %v2389_v21  ;;  %v499_v32 = vsel %vm444_vm0, %v440_v23, 0.0  ;;  %v564_v33 = vadd.bf16 %v3249_v7, %v425_v15  ;;  %2554 = vmatprep.subr.bf16.mxu1 %v3005_v35  ;;  %v442_v37 = vunpack.c.l.bf16 %v426_v24  ;;  %s3008_s14 = smov 96   ;;  %s2386_s25 = sshll.u32 %s3219_s3, 3 }
  0x7a   : > { %v500_v36 = vsel %vm444_vm0, %v441_v28, 0.0  ;;  %v443_v38 = vunpack.c.l.bf16 %v427_v25  ;;  %v565_v39 = vadd.bf16 %v3247_v6, %v426_v24  ;;  %2602 = vmatprep.subr.mxu0 %v3005_v35  ;;  %v457_v42 = vrot.slane %v456_v31, 4  ;;  %s2466_s29 = sshll.u32 %s3082_s13, 7  ;;  %s409_s5 = scalar_lea.vmem [#allocation11], %s2386_s25 }
  0x7b   : > { %v449_v41 = vadd.f32 %v448_v30, %v447_v20  ;;  %2539 = vmatmul.mubr.msk.bf16.vlgmr.msra.gmra.mxu0 %vm444_vm0, %v2390_v27  ;;  %v501_v43 = vadd.f32 %v500_v36, %v499_v32  ;;  %v2395_v44 = vcombine.low %v563_v29, %v564_v33  ;;  %v508_v48 = vsel %vm444_vm0, %v442_v37, 0.0  ;;  %v3305_v32 = vld [vmem:[%s3832_s2] ss:$0 sm:$0xff]  ;;  %s2261_s22 = sshll.u32 %s409_s5, 4  ;;  %s3787_s17 = scalar_lea.hbm %s3839_s9, %s2466_s29  ;;  %s3789_s22 = int_to_ptr.vmem [resolvable:$true] %s2261_s22 }
  0x7c   : > { %v509_v49 = vsel %vm444_vm0, %v443_v38, 0.0  ;;  %v566_v50 = vadd.bf16 %v3249_v7, %v427_v25  ;;  %v432_v51 = vunpack.c.l.bf16 %v416_v34  ;;  %v458_v53 = vadd.f32 %v457_v42, %v456_v31  ;;  %v421_v25 = vld [vmem:[%s3223_s24 + $0x24] sm:$0xf]  ;;  %s2248_s26 = scalar_lea.sflag [#allocation4], %s3219_s3  ;;  %s2924_s13 = scalar_lea.vmem %s3789_s22, 128 }
  0x7d   : > { %v450_v52 = vrot.slane %v449_v41, 2  ;;  %v502_v54 = vrot.slane %v501_v43, 4  ;;  %2550 = vmatprep.mubr.msk.bf16.mxu1 %vm444_vm0, %v2395_v44  ;;  %v510_v55 = vadd.f32 %v509_v49, %v508_v48  ;;  %v433_v57 = vunpack.c.l.bf16 %v417_v40  ;;  %p2925_p10 = scmp.ne.s32.totalorder %s3789_s22, %s2924_s13  ;;  %p3878_p12 = scmp.ne.s32.totalorder %s3859_s19, 0 }
  0x7e   : > { %v2396_v56 = vcombine.low %v565_v39, %v566_v50  ;;  %v555_v58 = vadd.bf16 %v3247_v6, %v416_v34  ;;  %v459_v60 = vrot.slane %v458_v53, 2  ;;  %v463_v62 = vsel %vm444_vm0, %v432_v51, 0.0  ;;  %s3010_s27 = smov [#allocation11]  }
  0x7f   : > { %v451_v59 = vadd.f32 %v450_v52, %v449_v41  ;;  %v511_v61 = vrot.slane %v510_v55, 4  ;;  %v464_v63 = vsel %vm444_vm0, %v433_v57, 0.0  ;;  %v556_v2 = vadd.bf16 %v3249_v7, %v417_v40  ;;  %v422_v40 = vld [vmem:[%s3223_s24 + $0x28] sm:$0xf]  ;;  %p2926_p7 = pnand %p2925_p10, %p3878_p12 }
  0x80   : > { %2551 = vmatmul.mubr.msk.bf16.vlgmr.msra.gmra.mxu1 %vm444_vm0, %v2396_v56  ;;  %v434_v3 = vunpack.c.l.bf16 %v418_v45  ;;  %v435_v4 = vunpack.c.l.bf16 %v419_v46  ;;  %v460_v5 = vadd.f32 %v459_v60, %v458_v53  ;;  %v503_v8 = vadd.f32 %v502_v54, %v501_v43 }
  0x81   : > { %v512_v9 = vadd.f32 %v511_v61, %v510_v55  ;;  %2555 = vmatpush3.bf16.msra.mxu1 %v2752_v47  ;;  %vm3006_vm1 = vmmov 0   ;;  %v465_v11 = vadd.f32 %v464_v63, %v463_v62  ;;  %v2391_v12 = vcombine.low %v555_v58, %v556_v2  ;;  %p2927_p1 = pneg %p2926_p7 }
  0x82   : > { %2558 = vmatprep.mubr.msk.bf16.mxu1 %vm3006_vm1, %v3005_v35  ;;  %v472_v13 = vsel %vm444_vm0, %v434_v3, 0.0  ;;  %v473_v14 = vsel %vm444_vm0, %v435_v4, 0.0  ;;  %2556 = vmatprep.subr.bf16.mxu1 %v3005_v35  ;;  %v452_v15 = vrot.slane %v451_v59, 1  ;;  %v461_v16 = vrot.slane %v460_v5, 1 }
  0x83   : > { %v466_v18 = vrot.slane %v465_v11, 4  ;;  %2542 = vmatprep.mubr.msk.bf16.mxu0 %vm444_vm0, %v2391_v12  ;;  %v474_v19 = vadd.f32 %v473_v14, %v472_v13  ;;  %v557_v20 = vadd.bf16 %v3247_v6, %v418_v45  ;;  %v558_v21 = vadd.bf16 %v3249_v7, %v419_v46  ;;  %v423_v45 = vld [vmem:[%s3223_s24 + $0x2c] sm:$0xf] }
  0x84   : > { %v462_v22 = vadd.f32 %v461_v16, %v460_v5  ;;  %v504_v23 = vrot.slane %v503_v8, 2  ;;  %v513_v24 = vrot.slane %v512_v9, 2  ;;  %v436_v29 = vunpack.c.l.bf16 %v420_v17 }
  0x85   : > { %2557 = vmatpush3.bf16.msra.mxu1 %v2753_v10  ;;  %v467_v26 = vadd.f32 %v466_v18, %v465_v11  ;;  %v475_v27 = vrot.slane %v474_v19, 4  ;;  %v2392_v28 = vcombine.low %v557_v20, %v558_v21  ;;  %v453_v30 = vadd.f32 %v452_v15, %v451_v59 }
  0x86   : > { %2562 = vmatprep.subr.bf16.mxu1 %v3005_v35  ;;  %v519_v31 = vmul.f32 0.0625, %v462_v22  ;;  %v437_v36 = vunpack.c.l.bf16 %v421_v25  ;;  %v481_v37 = vsel %vm444_vm0, %v436_v29, 0.0  ;;  %v505_v38 = vadd.f32 %v504_v23, %v503_v8 }
  0x87   : > { %v468_v33 = vrot.slane %v467_v26, 2  ;;  %v476_v34 = vadd.f32 %v475_v27, %v474_v19  ;;  %2543 = vmatmul.mubr.msk.bf16.gmra.mxu0 %vm444_vm0, %v2392_v28  ;;  %v514_v39 = vadd.f32 %v513_v24, %v512_v9  ;;  %v559_v44 = vadd.bf16 %v3247_v6, %v420_v17 }
  0x88   : > { %v482_v43 = vsel %vm444_vm0, %v437_v36, 0.0  ;;  %v518_v46 = vmul.f32 0.0625, %v453_v30  ;;  %v534_v47 = vadd.f32 %v3305_v32, %v519_v31  ;;  %v560_v51 = vadd.bf16 %v3249_v7, %v421_v25 }
  0x89   : > { %v469_v41 = vadd.f32 %v468_v33, %v467_v26  ;;  %v477_v42 = vrot.slane %v476_v34, 2  ;;  %v483_v48 = vadd.f32 %v482_v43, %v481_v37  ;;  %v438_v52 = vunpack.c.l.bf16 %v422_v40 }
  0x8a   : > { %v506_v53 = vrot.slane %v505_v38, 1  ;;  %v515_v54 = vrot.slane %v514_v39, 1  ;;  %v439_v56 = vunpack.c.l.bf16 %v423_v45  ;;  %v2393_v59 = vcombine.low %v559_v44, %v560_v51 }
  0x8b   : > { %v470_v49 = vrot.slane %v469_v41, 1  ;;  %v478_v50 = vadd.f32 %v477_v42, %v476_v34  ;;  %v484_v55 = vrot.slane %v483_v48, 4  ;;  %v490_v60 = vsel %vm444_vm0, %v438_v52, 0.0 }
  0x8c   : > { %v533_v61 = vadd.f32 %v3305_v32, %v518_v46  ;;  %v542_v62 = vpack.c.bf16 %v534_v47, %v534_v47  ;;  %v491_v2 = vsel %vm444_vm0, %v439_v56, 0.0  ;;  %2546 = vmatprep.mubr.msk.bf16.mxu0 %vm444_vm0, %v2393_v59  ;;  %v561_v8 = vadd.bf16 %v3247_v6, %v422_v40 }
  0x8d   : > { %v471_v57 = vadd.f32 %v470_v49, %v469_v41  ;;  %v479_v58 = vrot.slane %v478_v50, 1  ;;  %v485_v63 = vadd.f32 %v484_v55, %v483_v48  ;;  %v492_v5 = vadd.f32 %v491_v2, %v490_v60 }
  0x8e   : > { %v507_v9 = vadd.f32 %v506_v53, %v505_v38  ;;  %v562_v11 = vadd.bf16 %v3249_v7, %v423_v45  ;;  %v516_v12 = vadd.f32 %v515_v54, %v514_v39  ;;  %v541_v16 = vpack.c.bf16 %v533_v61, %v533_v61 }
  0x8f   : > { %v520_v3 = vmul.f32 0.0625, %v471_v57  ;;  %v480_v4 = vadd.f32 %v479_v58, %v478_v50  ;;  %v486_v10 = vrot.slane %v485_v63, 2  ;;  %v493_v15 = vrot.slane %v492_v5, 4 }
  0x90   : > { %v2394_v18 = vcombine.low %v561_v8, %v562_v11  ;;  %v771_v19 = vunpack.c.l.b16 %v542_v62  ;;  %v524_v23 = vmul.f32 0.0625, %v507_v9  ;;  %v525_v7 = vmul.f32 0.0625, %v516_v12  ;;  %v3363_v11 = vld [vmem:[%s3836_s6] ss:$0 sm:$0xff] }
  0x91   : > { %v535_v13 = vadd.f32 %v3305_v32, %v520_v3  ;;  %v521_v14 = vmul.f32 0.0625, %v480_v4  ;;  %v487_v17 = vadd.f32 %v486_v10, %v485_v63  ;;  %v494_v22 = vadd.f32 %v493_v15, %v492_v5 }
  0x92   : > { %2547 = vmatmul.mubr.msk.bf16.gmra.mxu0 %vm444_vm0, %v2394_v18  ;;  %v770_v28 = vunpack.c.l.b16 %v541_v16  ;;  %v778_v29 = vrot.slane %v771_v19, 7  ;;  %v539_v31 = vadd.f32 %v3305_v32, %v524_v23  ;;  %vm779_vm2 = vcmask 1041409  }
  0x93   : > { %v543_v20 = vpack.c.bf16 %v535_v13, %v535_v13  ;;  %v536_v21 = vadd.f32 %v3305_v32, %v521_v14  ;;  %v488_v24 = vrot.slane %v487_v17, 1  ;;  %v495_v25 = vrot.slane %v494_v22, 2  ;;  %2610 = vmatprep.mubr.msk.f32.mxu0 %vm3006_vm1, %v3005_v35 }
  0x94   : > { %v540_v37 = vadd.f32 %v3305_v32, %v525_v7  ;;  %v780_v41 = vsel %vm779_vm2, %v778_v29, %v770_v28  ;;  %vm782_vm3 = vcmask 1042434   ;;  %v547_v42 = vpack.c.bf16 %v539_v31, %v539_v31 }
  0x95   : > { %v544_v6 = vpack.c.bf16 %v536_v21, %v536_v21  ;;  %v772_v26 = vunpack.c.l.b16 %v543_v20  ;;  %v489_v27 = vadd.f32 %v488_v24, %v487_v17  ;;  %v496_v30 = vadd.f32 %v495_v25, %v494_v22 }
  0x96   : > { %v548_v46 = vpack.c.bf16 %v540_v37, %v540_v37  ;;  %vm785_vm4 = vcmask 1043459   ;;  %v776_v50 = vunpack.c.l.b16 %v547_v42  ;;  %vm788_vm5 = vcmask 1044484  }
  0x97   : > { %v522_v33 = vmul.f32 0.0625, %v489_v27  ;;  %v773_v34 = vunpack.c.l.b16 %v544_v6  ;;  %v497_v36 = vrot.slane %v496_v30, 1  ;;  %v781_v38 = vrot.slane %v772_v26, 6 }
  0x98   : > { %v777_v53 = vunpack.c.l.b16 %v548_v46  ;;  %v793_v56 = vrot.slane %v776_v50, 2  ;;  %vm3848_vm6 = vcmask 1045509   ;;  %vm3847_vm7 = vcmask 1046534  }
  0x99   : > { %v537_v39 = vadd.f32 %v3305_v32, %v522_v33  ;;  %v498_v40 = vadd.f32 %v497_v36, %v496_v30  ;;  %v784_v44 = vrot.slane %v773_v34, 5  ;;  %v783_v48 = vsel %vm782_vm3, %v781_v38, %v780_v41 }
  0x9a   : > { %v796_v59 = vrot.slane %v777_v53, 1  ;;  %vm3846_vm8 = vcmask 1047559   ;;  %v895_v63 = vlaneseq }
  0x9b   : > { %v545_v43 = vpack.c.bf16 %v537_v39, %v537_v39  ;;  %v523_v45 = vmul.f32 0.0625, %v498_v40  ;;  %v786_v54 = vsel %vm785_vm4, %v784_v44, %v783_v48  ;;  %v3009_v44 = vmov 1966171168  }
  0x9c   : > { %v3344_v2 = vand.u32 127, %v895_v63  ;;  %v3346_v3 = vshrl.u32 %v895_v63, 7 }
  0x9d   : > { %v774_v47 = vunpack.c.l.b16 %v545_v43  ;;  %v538_v49 = vadd.f32 %v3305_v32, %v523_v45  ;;  %v936_v45 = vunpack.c.l.s4 %v3009_v44 }
  0x9e   : > { %v907_v4 = vadd.s32 1, %v3344_v2  ;;  %v899_v5 = vadd.s32 24, %v3346_v3  ;;  %v898_v9 = vadd.s32 16, %v3346_v3  ;;  %v897_v10 = vadd.s32 8, %v3346_v3 }
  0x9f   : > { %v787_v51 = vrot.slane %v774_v47, 4  ;;  %v546_v52 = vpack.c.bf16 %v538_v49, %v538_v49  ;;  %v937_v46 = vunpack.c.0.s8 %v936_v45  ;;  %v2407_v47 = vld [vmem:[%s3834_s4] ss:$0 sm:$0xff]  ;;  %v3450_v53 = vsub.s32 0, %v3346_v3 }
  0xa0   : > { %v908_v8 = vmul.u32 8, %v907_v4 }
  0xa1   : > { %v775_v55 = vunpack.c.l.b16 %v546_v52  ;;  %v789_v57 = vsel %vm788_vm5, %v787_v51, %v786_v54  ;;  %v3446_v48 = vsub.s32 %v937_v46, %v3346_v3 }
  0xa2   : > { %vm912_vm10 = vcmp.lt.s32.totalorder %v899_v5, %v908_v8  ;;  %vm911_vm13 = vcmp.lt.s32.totalorder %v898_v9, %v908_v8 }
  0xa3   : > { %v790_v58 = vrot.slane %v775_v55, 3 }
  0xa5   : > { %v792_v60 = vsel %vm3848_vm6, %v790_v58, %v789_v57 }
  0xa6   : > { %v795_v32 = vsel %vm3847_vm7, %v793_v56, %v792_v60 }
  0xa7   : > { %v798_v61 = vsel %vm3846_vm8, %v796_v59, %v795_v32  ;;  %vm910_vm8 = vcmp.lt.s32.totalorder %v897_v10, %v908_v8 }
  0xa8   : > { %v799_v62 = vpack.c.b16 %v798_v61, %v798_v61 }
  0xaa   : > { %2559 = vmatmul.mubr.msk.bf16.vlgmr.msra.gmra.mxu1 %vm444_vm0, %v799_v62 }
  0xab   : > { %2563 = vmatpush3.bf16.msra.mxu1 %v3237_v0  ;;  %2566 = vmatprep.mubr.msk.bf16.mxu1 %vm3006_vm1, %v3005_v35  ;;  %v902_v0 = vmul.u32 8, %v3344_v2 }
  0xac   : > { %2564 = vmatprep.subr.bf16.mxu1 %v3005_v35 }
  0xad   : > { %vm906_vm9 = vcmp.ge.s32.totalorder %v899_v5, %v902_v0  ;;  %vm905_vm12 = vcmp.ge.s32.totalorder %v898_v9, %v902_v0  ;;  %vm904_vm15 = vcmp.ge.s32.totalorder %v897_v10, %v902_v0 }
  0xae   : > { %vm916_vm11 = vmand %vm906_vm9, %vm912_vm10  ;;  %vm903_vm9 = vcmp.ge.s32.totalorder %v3346_v3, %v902_v0  ;;  %vm909_vm10 = vcmp.lt.s32.totalorder %v3346_v3, %v908_v8 }
  0xaf   : > { %2565 = vmatpush3.bf16.msra.mxu1 %v3239_v1  ;;  %v3007_v1 = vmov 1.0   ;;  %vm915_vm14 = vmand %vm905_vm12, %vm911_vm13  ;;  %vm3869_vm12 = vcmask 1045509   ;;  %vm3870_vm13 = vcmask 1046534  }
  0xb0   : > { %2570 = vmatprep.subr.msk.mxu1 %vm916_vm11, %v3007_v1  ;;  %2603 = vmatpush3.msk.msra.mxu0 %vm916_vm11, %v3007_v1  ;;  %vm914_vm7 = vmand %vm904_vm15, %vm910_vm8  ;;  %vm1737_vm8 = vcmask 1043456  }
  0xb1   : > { %2604 = vmatprep.subr.mxu0 %v3005_v35  ;;  %vm913_vm6 = vmand %vm903_vm9, %vm909_vm10 }
  0xb2   : > { %2567 = vmatmul.mubr.msk.bf16.vlgmr.msra.gmra.mxu1 %vm444_vm0, %v799_v62  ;;  %2605 = vmatpush3.msk.msra.mxu0 %vm915_vm14, %v3007_v1  ;;  %vm3872_vm15 = vmmov %vm3869_vm12 }
  0xb3   : > { %2571 = vmatpush3.msk.msra.mxu1 %vm916_vm11, %v3007_v1  ;;  %2606 = vmatprep.subr.mxu0 %v3005_v35  ;;  %vm3873_vm9 = vmmov %vm3870_vm13 }
  0xb4   : > { %2572 = vmatprep.subr.msk.mxu1 %vm915_vm14, %v3007_v1  ;;  %2607 = vmatpush3.msk.msra.mxu0 %vm914_vm7, %v3007_v1 }
  0xb5   : > { %2573 = vmatpush3.msk.msra.mxu1 %vm915_vm14, %v3007_v1  ;;  %2608 = vmatprep.subr.mxu0 %v3005_v35  ;;  %vm3871_vm14 = vcmask 1047559  }
  0xb6   : > { %2574 = vmatprep.subr.msk.mxu1 %vm914_vm7, %v3007_v1  ;;  %2609 = vmatpush3.msk.msra.mxu0 %vm913_vm6, %v3007_v1  ;;  %vm3874_vm10 = vmmov %vm3871_vm14 }
  0xb7   : > { %2575 = vmatpush3.msk.msra.mxu1 %vm914_vm7, %v3007_v1  ;;  %2613 = vmatprep.subr.mxu0 %v3005_v35 }
  0xb8   : > { %2576 = vmatprep.subr.msk.mxu1 %vm913_vm6, %v3007_v1 }
  0xb9   : > { %2577 = vmatpush3.msk.msra.mxu1 %vm913_vm6, %v3007_v1 }
  0xba   : > { %2644 = vmatprep.subr.bf16.mxu1 %v3005_v35 }
 0x13b   : > { %v2540_v12 = vpop.f32.mrf.mxu0 }
 0x13c   : > { %v3366_v13 = vadd.f32 %v2540_v12, %v3363_v11 }
 0x13d   : > { %v688_v14 = vpop.f32.mrf.mxu0 }
 0x13e   : > { %v3369_v15 = vadd.f32 %v3363_v11, %v688_v14  ;;  %2029 = vrot.lane.b32.xlu1 %v3366_v13, %s3008_s14 }
 0x13f   : > { %v2541_v16 = vpop.f32.mrf.mxu0 }
 0x140   : > { %v2552_v17 = vpop.f32.mrf.mxu1  ;;  %v3374_v18 = vadd.f32 %v2541_v16, %v3363_v11  ;;  %2025 = vrot.lane.b32.xlu0 %v3369_v15, %s3008_s14 }
 0x141   : > { %v691_v21 = vpop.f32.mrf.mxu0  ;;  %v3431_v42 = vadd.f32 %v2552_v17, %v3363_v11 }
 0x142   : > { %v736_v19 = vpop.f32.mrf.mxu1  ;;  %2031 = vrot.lane.b32.xlu1 %v3374_v18, %s3008_s14  ;;  %v692_v23 = vadd.f32 %v3363_v11, %v691_v21 }
 0x143   : > { %v3381_v20 = vadd.f32 %v3363_v11, %v736_v19 }
 0x144   : > { %v2553_v22 = vpop.f32.mrf.mxu1 }
 0x145   : > { %2049 = vrot.lane.b32.xlu0 %v3381_v20, %s3008_s14  ;;  %v3438_v43 = vadd.f32 %v2553_v22, %v3363_v11 }
 0x146   : > { %v739_v24 = vpop.f32.mrf.mxu1 }
 0x147   : > { %v3387_v6 = vadd.f32 %v3363_v11, %v739_v24  ;;  %v2544_v25 = vpop.f32.mrf.mxu0 }
 0x148   : > { %v3390_v7 = vadd.f32 %v2544_v25, %v3363_v11 }
 0x149   : > { %2051 = vrot.lane.b32.xlu1 %v3387_v6, %s3008_s14  ;;  %2027 = vrot.lane.b32.xlu0 %v692_v23, %s3008_s14  ;;  %v704_v26 = vpop.f32.mrf.mxu0 }
 0x14a   : > { %v3396_v28 = vadd.f32 %v3363_v11, %v704_v26 }
 0x14b   : > { %v2545_v27 = vpop.f32.mrf.mxu0 }
 0x14c   : > { %v3399_v29 = vadd.f32 %v2545_v27, %v3363_v11 }
 0x14d   : > { %2037 = vrot.lane.b32.xlu0 %v3390_v7, %s3008_s14  ;;  %v707_v30 = vpop.f32.mrf.mxu0 }
 0x14e   : > { %v3404_v31 = vadd.f32 %v3363_v11, %v707_v30  ;;  %2039 = vrot.lane.b32.xlu1 %v3399_v29, %s3008_s14 }
 0x151   : > { %2033 = vrot.lane.b32.xlu0 %v3396_v28, %s3008_s14 }
 0x152   : > { %2035 = vrot.lane.b32.xlu1 %v3404_v31, %s3008_s14  ;;  %v2548_v33 = vpop.f32.mrf.mxu0 }
 0x153   : > { %v3413_v34 = vadd.f32 %v2548_v33, %v3363_v11 }
 0x154   : > { %v720_v36 = vpop.f32.mrf.mxu0 }
 0x155   : > { %v3416_v37 = vadd.f32 %v3363_v11, %v720_v36  ;;  %2045 = vrot.lane.b32.xlu0 %v3413_v34, %s3008_s14 }
 0x156   : > { %v2549_v38 = vpop.f32.mrf.mxu0 }
 0x157   : > { %v3421_v39 = vadd.f32 %v2549_v38, %v3363_v11 }
 0x158   : > { %v723_v40 = vpop.f32.mrf.mxu0 }
 0x159   : > { %2047 = vrot.lane.b32.xlu1 %v3421_v39, %s3008_s14  ;;  %v3426_v41 = vadd.f32 %v3363_v11, %v723_v40  ;;  %2041 = vrot.lane.b32.xlu0 %v3416_v37, %s3008_s14 }
 0x15d   : > { %2043 = vrot.lane.b32.xlu1 %v3426_v41, %s3008_s14  ;;  %2053 = vrot.lane.b32.xlu0 %v3431_v42, %s3008_s14 }
 0x161   : > { %2055 = vrot.lane.b32.xlu1 %v3438_v43, %s3008_s14 }
 0x16a   : > { %v849_v49 = vpop.f32.mrf.mxu1 }
 0x16b   : > { %v850_v50 = vadd.f32 %v2407_v47, %v849_v49 }
 0x16c   : > { %v2560_v51 = vpop.f32.mrf.mxu1 }
 0x16d   : > { %v941_v52 = vrot.slane %v850_v50, %v3446_v48  ;;  %v934_v59 = vcombine.high %v850_v50, %v850_v50 }
 0x16e   : > { %v852_v54 = vpop.f32.mrf.mxu1 }
 0x16f   : > { %v949_v55 = vcombine.high %v941_v52, %v941_v52  ;;  %v957_v56 = vrot.slane %v941_v52, %v3446_v48  ;;  %v948_v9 = vrot.slane %v934_v59, %v3446_v48 }
 0x170   : > { %v2561_v57 = vpop.f32.mrf.mxu1 }
 0x171   : > { %v971_v58 = vrot.slane %v949_v55, %v3446_v48  ;;  %v979_v60 = vcombine.high %v957_v56, %v957_v56  ;;  %v986_v32 = vrot.slane %v957_v56, %v3450_v53  ;;  %v950_v16 = vcombine.high %v948_v9, %v948_v9 }
 0x172   : > { %v889_v61 = vpop.f32.mrf.mxu1  ;;  %v964_v17 = vrot.slane %v948_v9, %v3446_v48 }
 0x173   : > { %v890_v62 = vadd.f32 %v3363_v11, %v889_v61  ;;  %v1024_v63 = vmul.f32 %v986_v32, %v692_v23  ;;  %v1023_v4 = vmul.f32 %v986_v32, %v3369_v15  ;;  %v990_v5 = vrot.slane %v971_v58, %v3450_v53 }
 0x174   : > { %v2568_v0 = vpop.f32.mrf.mxu1  ;;  %v981_v1 = vcombine.high %v971_v58, %v971_v58  ;;  %v994_v12 = vrot.slane %v979_v60, %v3450_v53  ;;  %v978_v22 = vrot.slane %v950_v16, %v3446_v48  ;;  %v1002_v23 = vrot.slane %v964_v17, %v3450_v53 }
 0x175   : > { %v1232_v8 = vmul.f32 %v890_v62, %v850_v50  ;;  %2005 = vrot.lane.b32.xlu0 %v890_v62, %s3008_s14  ;;  %2578 = vmatprep.mubr.msk.f32.mxu1 %vm444_vm0, %v1023_v4  ;;  %v1025_v10 = vmul.f32 %v990_v5, %v3366_v13  ;;  %v1026_v15 = vmul.f32 %v990_v5, %v3374_v18  ;;  %s2928_s14 = sshll.u32 %s3010_s27, 4  ;;  %s2929_s14 = int_to_ptr.vmem [resolvable:$false] %s2928_s14 }
 0x176   : > { %v892_v14 = vpop.f32.mrf.mxu1  ;;  %2579 = vmatmul.mubr.msk.f32.vlgmr.msra.gmra.mxu1 %vm444_vm0, %v1024_v63  ;;  %v1027_v13 = vmul.f32 %v994_v12, %v3396_v28  ;;  %v998_v19 = vrot.slane %v981_v1, %v3450_v53  ;;  %v1028_v21 = vmul.f32 %v994_v12, %v3404_v31  ;;  %v980_v25 = vcombine.high %v964_v17, %v964_v17  ;;  %s2930_s20 = scalar_lea.vmem %s2929_s14, 256  ;;  %p2931_p13 = scmp.lt.s32.totalorder %s3789_s22, %s2929_s14 }
 0x177   : > { %2611 = vmatmul.mubr.msk.f32.vlgmr.msra.gmra.mxu0 %vm444_vm0, %v1232_v8  ;;  %2581 = vmatprep.mubr.msk.f32.mxu1 %vm444_vm0, %v1025_v10  ;;  %v1031_v26 = vmul.f32 %v1002_v23, %v3416_v37  ;;  %v1006_v27 = vrot.slane %v978_v22, %v3450_v53  ;;  %v1032_v28 = vmul.f32 %v1002_v23, %v3426_v41  ;;  %p2932_p0 = scmp.lt.s32.totalorder %s2930_s20, %s2924_s13 }
 0x178   : > { %v2569_v11 = vpop.f32.mrf.mxu1  ;;  %2615 = vmatprep.mubr.msk.f32.mxu0 %vm3006_vm1, %v3005_v35  ;;  %v1029_v18 = vmul.f32 %v998_v19, %v3390_v7  ;;  %v1030_v24 = vmul.f32 %v998_v19, %v3399_v29  ;;  %v1010_v30 = vrot.slane %v980_v25, %v3450_v53  ;;  %v982_v31 = vcombine.high %v978_v22, %v978_v22 }
 0x179   : > { %v1033_v7 = vmul.f32 %v1006_v27, %v3413_v34  ;;  %v1034_v29 = vmul.f32 %v1006_v27, %v3421_v39  ;;  %v927_v39 = vadd.s32 1, %v3346_v3  ;;  %p2933_p11 = por %p2932_p0, %p2931_p13 }
 0x17a   : > { %2582 = vmatmul.mubr.msk.f32.gmra.mxu1 %vm444_vm0, %v1026_v15  ;;  %v1035_v33 = vmul.f32 %v1010_v30, %v3381_v20  ;;  %v1014_v36 = vrot.slane %v982_v31, %v3450_v53  ;;  %v1036_v37 = vmul.f32 %v1010_v30, %v3387_v6  ;;  %v925_v20 = vmul.u32 8, %v3346_v3 }
 0x17b   : > { %2584 = vmatprep.mubr.msk.f32.mxu1 %vm444_vm0, %v1027_v13  ;;  %v928_v6 = vmul.u32 8, %v927_v39  ;;  %p2934_p5 = pnand %p2933_p11, %p2927_p1 }
 0x17c   : > { %v1037_v34 = vmul.f32 %v1014_v36, %v3431_v42  ;;  %v1038_v38 = vmul.f32 %v1014_v36, %v3438_v43  ;;  %vm926_vm6 = vcmp.ge.s32.totalorder %v3344_v2, %v925_v20 }
 0x17d   : > { %vm929_vm7 = vcmp.lt.s32.totalorder %v3344_v2, %v928_v6 }
 0x17e   : > { %2585 = vmatmul.mubr.msk.f32.gmra.mxu1 %vm444_vm0, %v1028_v21  ;;  %vm930_vm11 = vmand %vm926_vm6, %vm929_vm7 }
 0x17f   : > { %2587 = vmatprep.mubr.msk.f32.mxu1 %vm444_vm0, %v1029_v18  ;;  %v3508_v40 = vsel %vm930_vm11, 1.0, %v3005_v35  ;;  %vm3875_vm6 = vmmov %vm3869_vm12 }
 0x180   : > { %2614 = vmatpush3.msk.msra.mxu0 %vm1737_vm8, %v3508_v40  ;;  %vm3876_vm7 = vmmov %vm3873_vm9 }
 0x181   : > { %2618 = vmatprep.subr.msk.mxu0 %vm1737_vm8, %v3508_v40 }
 0x182   : > { %2588 = vmatmul.mubr.msk.f32.gmra.mxu1 %vm444_vm0, %v1030_v24 }
 0x183   : > { %2590 = vmatprep.mubr.msk.f32.mxu1 %vm444_vm0, %v1031_v26 }
 0x186   : > { %2591 = vmatmul.mubr.msk.f32.gmra.mxu1 %vm444_vm0, %v1032_v28 }
 0x187   : > { %2593 = vmatprep.mubr.msk.f32.mxu1 %vm444_vm0, %v1033_v7 }
 0x18a   : > { %2594 = vmatmul.mubr.msk.f32.gmra.mxu1 %vm444_vm0, %v1034_v29 }
 0x18b   : > { %2596 = vmatprep.mubr.msk.f32.mxu1 %vm444_vm0, %v1035_v33 }
 0x18e   : > { %2597 = vmatmul.mubr.msk.f32.gmra.mxu1 %vm444_vm0, %v1036_v37 }
 0x18f   : > { %2599 = vmatprep.mubr.msk.f32.mxu1 %vm444_vm0, %v1037_v34 }
 0x192   : > { %2600 = vmatmul.mubr.msk.f32.gmra.mxu1 %vm444_vm0, %v1038_v38 }
 0x193   : > { %2648 = vmatprep.mubr.msk.bf16.mxu1 %vm3006_vm1, %v3005_v35  ;;  %vm1306_vm1 = vcmask 31744  }
 0x236   : > { %v3514_v41 = vpop.f32.mrf.mxu1 }
 0x237   : > { %v3516_v42 = vpop.f32.mrf.mxu0  ;;  %v1308_v56 = vsel %vm1306_vm1, %v3514_v41, -inf }
 0x238   : > { %v3518_v3 = vpop.f32.mrf.mxu1 }
 0x239   : > { %v2612_v43 = vpop.f32.mrf.mxu0  ;;  %v1307_v49 = vsel %vm1306_vm1, %v3518_v3, -inf }
 0x23a   : > { %v3520_v44 = vpop.f32.mrf.mxu1  ;;  %v1309_v58 = vmax.f32 %v1307_v49, %v1308_v56 }
 0x23b   : > { %v1317_v50 = vsel %vm1306_vm1, %v3520_v44, -inf }
 0x23c   : > { %v3522_v2 = vpop.f32.mrf.mxu1  ;;  %v1310_v5 = vrot.slane %v1309_v58, 4 }
 0x23d   : > { %v1316_v46 = vsel %vm1306_vm1, %v3522_v2, -inf }
 0x23e   : > { %v3524_v45 = vpop.f32.mrf.mxu1  ;;  %v1318_v52 = vmax.f32 %v1316_v46, %v1317_v50  ;;  %v1311_v15 = vmax.f32 %v1309_v58, %v1310_v5 }
 0x23f   : > { %v1326_v54 = vsel %vm1306_vm1, %v3524_v45, -inf }
 0x240   : > { %v3528_v47 = vpop.f32.mrf.mxu1  ;;  %v1319_v61 = vrot.slane %v1318_v52, 4  ;;  %v1312_v26 = vrot.slane %v1311_v15, 2 }
 0x241   : > { %v1325_v51 = vsel %vm1306_vm1, %v3528_v47, -inf }
 0x242   : > { %v3538_v55 = vpop.f32.mrf.mxu1  ;;  %v1327_v57 = vmax.f32 %v1325_v51, %v1326_v54  ;;  %v1320_v10 = vmax.f32 %v1318_v52, %v1319_v61  ;;  %v1313_v20 = vmax.f32 %v1311_v15, %v1312_v26 }
 0x243   : > { %v1335_v60 = vsel %vm1306_vm1, %v3538_v55, -inf }
 0x244   : > { %v3542_v59 = vpop.f32.mrf.mxu1  ;;  %v1328_v4 = vrot.slane %v1327_v57, 4  ;;  %v1321_v22 = vrot.slane %v1320_v10, 2 }
 0x245   : > { %v1334_v32 = vsel %vm1306_vm1, %v3542_v59, -inf }
 0x246   : > { %v1336_v62 = vmax.f32 %v1334_v32, %v1335_v60  ;;  %v3548_v63 = vpop.f32.mrf.mxu1  ;;  %v1329_v11 = vmax.f32 %v1327_v57, %v1328_v4  ;;  %v1322_v33 = vmax.f32 %v1320_v10, %v1321_v22  ;;  %v1314_v60 = vrot.slane %v1313_v20, 1 }
 0x247   : > { %v1344_v9 = vsel %vm1306_vm1, %v3548_v63, -inf }
 0x248   : > { %v1337_v0 = vrot.slane %v1336_v62, 4  ;;  %v3550_v8 = vpop.f32.mrf.mxu1  ;;  %v1330_v25 = vrot.slane %v1329_v11, 2  ;;  %v1323_v52 = vrot.slane %v1322_v33, 1 }
 0x249   : > { %v1343_v1 = vsel %vm1306_vm1, %v3550_v8, -inf }
 0x24a   : > { %v1345_v12 = vmax.f32 %v1343_v1, %v1344_v9  ;;  %v3556_v14 = vpop.f32.mrf.mxu1  ;;  %v1338_v16 = vmax.f32 %v1336_v62, %v1337_v0  ;;  %v1331_v38 = vmax.f32 %v1329_v11, %v1330_v25  ;;  %v1324_v5 = vmax.f32 %v1322_v33, %v1323_v52 }
 0x24b   : > { %v1353_v19 = vsel %vm1306_vm1, %v3556_v14, -inf }
 0x24c   : > { %v1346_v17 = vrot.slane %v1345_v12, 4  ;;  %v3558_v13 = vpop.f32.mrf.mxu1  ;;  %v1339_v27 = vrot.slane %v1338_v16, 2  ;;  %v1332_v58 = vrot.slane %v1331_v38, 1 }
 0x24d   : > { %v1352_v21 = vsel %vm1306_vm1, %v3558_v13, -inf }
 0x24e   : > { %v1347_v18 = vmax.f32 %v1345_v12, %v1346_v17  ;;  %v1354_v23 = vmax.f32 %v1352_v21, %v1353_v19  ;;  %v3564_v24 = vpop.f32.mrf.mxu1  ;;  %v1340_v39 = vmax.f32 %v1338_v16, %v1339_v27  ;;  %v1333_v10 = vmax.f32 %v1331_v38, %v1332_v58 }
 0x24f   : > { %v1362_v31 = vsel %vm1306_vm1, %v3564_v24, -inf  ;;  %v1315_v12 = vmax.f32 %v1313_v20, %v1314_v60 }
 0x250   : > { %v1355_v28 = vrot.slane %v1354_v23, 4  ;;  %v3566_v7 = vpop.f32.mrf.mxu1  ;;  %v1348_v30 = vrot.slane %v1347_v18, 2  ;;  %v1341_v32 = vrot.slane %v1340_v39, 1 }
 0x251   : > { %v1361_v29 = vsel %vm1306_vm1, %v3566_v7, -inf  ;;  %v1387_v19 = vsel %vm779_vm2, %v1324_v5, %v1315_v12 }
 0x252   : > { %v1356_v36 = vmax.f32 %v1354_v23, %v1355_v28  ;;  %v1363_v37 = vmax.f32 %v1361_v29, %v1362_v31  ;;  %v3572_v34 = vpop.f32.mrf.mxu1  ;;  %v1349_v49 = vmax.f32 %v1347_v18, %v1348_v30  ;;  %v1342_v11 = vmax.f32 %v1340_v39, %v1341_v32 }
 0x253   : > { %v1371_v50 = vsel %vm1306_vm1, %v3572_v34, -inf  ;;  %v1388_v18 = vsel %vm782_vm3, %v1333_v10, %v1387_v19 }
 0x254   : > { %v1357_v6 = vrot.slane %v1356_v36, 2  ;;  %v1364_v43 = vrot.slane %v1363_v37, 4  ;;  %v3574_v46 = vpop.f32.mrf.mxu1  ;;  %v1350_v4 = vrot.slane %v1349_v49, 1  ;;  %v1389_v25 = vsel %vm785_vm4, %v1342_v11, %v1388_v18 }
 0x255   : > { %v1370_v51 = vsel %vm1306_vm1, %v3574_v46, -inf }
 0x256   : > { %v1358_v54 = vmax.f32 %v1356_v36, %v1357_v6  ;;  %v1365_v56 = vmax.f32 %v1363_v37, %v1364_v43  ;;  %v1372_v57 = vmax.f32 %v1370_v51, %v1371_v50  ;;  %v1351_v17 = vmax.f32 %v1349_v49, %v1350_v4 }
 0x258   : > { %v1366_v61 = vrot.slane %v1365_v56, 2  ;;  %v1373_v62 = vrot.slane %v1372_v57, 4  ;;  %v1359_v0 = vrot.slane %v1358_v54, 1  ;;  %v1390_v27 = vsel %vm788_vm5, %v1351_v17, %v1389_v25 }
 0x25a   : > { %v1367_v9 = vmax.f32 %v1365_v56, %v1366_v61  ;;  %v1374_v1 = vmax.f32 %v1372_v57, %v1373_v62  ;;  %v1360_v21 = vmax.f32 %v1358_v54, %v1359_v0 }
 0x25c   : > { %v1368_v15 = vrot.slane %v1367_v9, 1  ;;  %v1375_v16 = vrot.slane %v1374_v1, 2  ;;  %v1391_v28 = vsel %vm3869_vm12, %v1360_v21, %v1390_v27 }
 0x25e   : > { %v1376_v22 = vmax.f32 %v1374_v1, %v1375_v16  ;;  %v1369_v23 = vmax.f32 %v1367_v9, %v1368_v15 }
 0x260   : > { %v1377_v26 = vrot.slane %v1376_v22, 1  ;;  %v1392_v31 = vsel %vm3870_vm13, %v1369_v23, %v1391_v28 }
 0x262   : > { %v1378_v30 = vmax.f32 %v1376_v22, %v1377_v26 }
 0x264   : > { %v1393_v29 = vsel %vm3871_vm14, %v1378_v30, %v1392_v31 }
 0x265   : > { %v3588_v33 = vmax.f32 %v3516_v42, %v1393_v29 }
 0x267   : > { %v1400_v36 = vcombine.high %v3588_v33, %v3588_v33  ;;  %v1407_v37 = vrot.slane %v3588_v33, %v3446_v48 }
 0x269   : > { %v1414_v38 = vrot.slane %v1400_v36, %v3446_v48  ;;  %v1415_v20 = vcombine.high %v1407_v37, %v1407_v37  ;;  %v1423_v39 = vrot.slane %v1407_v37, %v3446_v48 }
 0x26b   : > { %v1416_v6 = vcombine.high %v1414_v38, %v1414_v38  ;;  %v1437_v43 = vrot.slane %v1415_v20, %v3446_v48  ;;  %v1445_v49 = vcombine.high %v1423_v39, %v1423_v39  ;;  %v1452_v50 = vrot.slane %v1423_v39, %v3450_v53 }
 0x26c   : > { %v1430_v51 = vrot.slane %v1414_v38, %v3446_v48 }
 0x26d   : > { %v1447_v52 = vcombine.high %v1437_v43, %v1437_v43  ;;  %v1456_v54 = vrot.slane %v1437_v43, %v3450_v53  ;;  %v1460_v56 = vrot.slane %v1445_v49, %v3450_v53  ;;  %v1444_v57 = vrot.slane %v1416_v6, %v3446_v48 }
 0x26e   : > { %v1489_v60 = vsub.f32 %v3518_v3, %v1452_v50  ;;  %v1490_v32 = vsub.f32 %v3514_v41, %v1452_v50  ;;  %v1446_v4 = vcombine.high %v1430_v51, %v1430_v51  ;;  %v1468_v5 = vrot.slane %v1430_v51, %v3450_v53 }
 0x26f   : > { %v1464_v58 = vrot.slane %v1447_v52, %v3450_v53  ;;  %v1491_v61 = vsub.f32 %v3522_v2, %v1456_v54  ;;  %v1492_v62 = vsub.f32 %v3520_v44, %v1456_v54  ;;  %v1493_v0 = vsub.f32 %v3528_v47, %v1460_v56 }
 0x270   : > { %v1494_v9 = vsub.f32 %v3524_v45, %v1460_v56  ;;  %v1448_v1 = vcombine.high %v1444_v57, %v1444_v57  ;;  %v1472_v10 = vrot.slane %v1444_v57, %v3450_v53  ;;  %v1505_v11 = vmul.f32 1.442695, %v1489_v60 }
 0x271   : > { %v1495_v12 = vsub.f32 %v3542_v59, %v1464_v58  ;;  %v1496_v3 = vsub.f32 %v3538_v55, %v1464_v58  ;;  %v1507_v41 = vmul.f32 1.442695, %v1490_v32  ;;  %v1509_v15 = vmul.f32 1.442695, %v1491_v61 }
 0x272   : > { %v1511_v2 = vmul.f32 1.442695, %v1492_v62  ;;  %v1476_v44 = vrot.slane %v1446_v4, %v3450_v53  ;;  %v1497_v16 = vsub.f32 %v3550_v8, %v1468_v5  ;;  %2756 = vpow2.f32 %v1505_v11 }
 0x273   : > { %v1513_v17 = vmul.f32 1.442695, %v1493_v0  ;;  %v1498_v47 = vsub.f32 %v3548_v63, %v1468_v5  ;;  %2758 = vpow2.f32 %v1507_v41  ;;  %v1515_v45 = vmul.f32 1.442695, %v1494_v9 }
 0x274   : > { %v1480_v19 = vrot.slane %v1448_v1, %v3450_v53  ;;  %v1499_v59 = vsub.f32 %v3558_v13, %v1472_v10  ;;  %2760 = vpow2.f32 %v1509_v15  ;;  %v1517_v21 = vmul.f32 1.442695, %v1495_v12 }
 0x275   : > { %v1500_v55 = vsub.f32 %v3556_v14, %v1472_v10  ;;  %2762 = vpow2.f32 %v1511_v2  ;;  %v1519_v22 = vmul.f32 1.442695, %v1496_v3  ;;  %v1501_v18 = vsub.f32 %v3566_v7, %v1476_v44 }
 0x276   : > { %2764 = vpow2.f32 %v1513_v17  ;;  %v1521_v8 = vmul.f32 1.442695, %v1497_v16  ;;  %v1502_v23 = vsub.f32 %v3564_v24, %v1476_v44  ;;  %v1523_v63 = vmul.f32 1.442695, %v1498_v47 }
 0x277   : > { %2766 = vpow2.f32 %v1515_v45  ;;  %v1503_v25 = vsub.f32 %v3574_v46, %v1480_v19  ;;  %v1525_v26 = vmul.f32 1.442695, %v1499_v59  ;;  %v1504_v13 = vsub.f32 %v3572_v34, %v1480_v19 }
 0x278   : > { %2768 = vpow2.f32 %v1517_v21  ;;  %v1527_v27 = vmul.f32 1.442695, %v1500_v55  ;;  %v1529_v14 = vmul.f32 1.442695, %v1501_v18  ;;  %v1531_v28 = vmul.f32 1.442695, %v1502_v23 }
 0x279   : > { %2770 = vpow2.f32 %v1519_v22  ;;  %v1533_v7 = vmul.f32 1.442695, %v1503_v25  ;;  %v1535_v30 = vmul.f32 1.442695, %v1504_v13  ;;  %v1396_v61 = vsub.f32 %v3516_v42, %v3588_v33 }
 0x27a   : > { %2772 = vpow2.f32 %v1521_v8 }
 0x27b   : > { %2774 = vpow2.f32 %v1523_v63  ;;  %v1397_v44 = vmul.f32 1.442695, %v1396_v61 }
 0x27c   : > { %2776 = vpow2.f32 %v1525_v26 }
 0x27d   : > { %2778 = vpow2.f32 %v1527_v27 }
 0x27e   : > { %2780 = vpow2.f32 %v1529_v14 }
 0x27f   : > { %v3623_v24 = vpop.eup %2756  ;;  %2782 = vpow2.f32 %v1531_v28 }
 0x280   : > { %v3625_v31 = vpop.eup %2758  ;;  %2784 = vpow2.f32 %v1533_v7  ;;  %v1537_v34 = vsel %vm1306_vm1, %v3623_v24, 0.0 }
 0x281   : > { %v3629_v46 = vpop.eup %2760  ;;  %2786 = vpow2.f32 %v1535_v30  ;;  %v1538_v29 = vsel %vm1306_vm1, %v3625_v31, 0.0 }
 0x282   : > { %v3633_v36 = vpop.eup %2762  ;;  %v1539_v37 = vadd.f32 %v1538_v29, %v1537_v34  ;;  %v1546_v38 = vsel %vm1306_vm1, %v3629_v46, 0.0  ;;  %2788 = vpow2.f32 %v1397_v44 }
 0x283   : > { %v3637_v20 = vpop.eup %2764  ;;  %v1547_v39 = vsel %vm1306_vm1, %v3633_v36, 0.0 }
 0x284   : > { %v3641_v6 = vpop.eup %2766  ;;  %v1540_v43 = vrot.slane %v1539_v37, 4  ;;  %v1548_v49 = vadd.f32 %v1547_v39, %v1546_v38  ;;  %v1555_v50 = vsel %vm1306_vm1, %v3637_v20, 0.0 }
 0x285   : > { %v3645_v51 = vpop.eup %2768  ;;  %v1556_v52 = vsel %vm1306_vm1, %v3641_v6, 0.0 }
 0x286   : > { %v3649_v54 = vpop.eup %2770  ;;  %v1541_v56 = vadd.f32 %v1540_v43, %v1539_v37  ;;  %v1549_v57 = vrot.slane %v1548_v49, 4  ;;  %v1557_v58 = vadd.f32 %v1556_v52, %v1555_v50  ;;  %v1564_v60 = vsel %vm1306_vm1, %v3645_v51, 0.0 }
 0x287   : > { %v3653_v32 = vpop.eup %2772  ;;  %v1565_v62 = vsel %vm1306_vm1, %v3649_v54, 0.0 }
 0x288   : > { %v3659_v4 = vpop.eup %2774  ;;  %v1542_v5 = vrot.slane %v1541_v56, 2  ;;  %v1550_v0 = vadd.f32 %v1549_v57, %v1548_v49  ;;  %v1558_v9 = vrot.slane %v1557_v58, 4  ;;  %v1566_v1 = vadd.f32 %v1565_v62, %v1564_v60 }
 0x289   : > { %v3661_v10 = vpop.eup %2776  ;;  %v1573_v12 = vsel %vm1306_vm1, %v3653_v32, 0.0  ;;  %v1574_v11 = vsel %vm1306_vm1, %v3659_v4, 0.0 }
 0x28a   : > { %v3667_v3 = vpop.eup %2778  ;;  %v1543_v42 = vadd.f32 %v1542_v5, %v1541_v56  ;;  %v1551_v33 = vrot.slane %v1550_v0, 2  ;;  %v1559_v41 = vadd.f32 %v1558_v9, %v1557_v58  ;;  %v1567_v15 = vrot.slane %v1566_v1, 4 }
 0x28b   : > { %v3669_v2 = vpop.eup %2780  ;;  %v1575_v16 = vadd.f32 %v1574_v11, %v1573_v12  ;;  %v1582_v17 = vsel %vm1306_vm1, %v3661_v10, 0.0  ;;  %v1583_v47 = vsel %vm1306_vm1, %v3667_v3, 0.0 }
 0x28c   : > { %v3675_v45 = vpop.eup %2782  ;;  %v1544_v19 = vrot.slane %v1543_v42, 1  ;;  %v1552_v59 = vadd.f32 %v1551_v33, %v1550_v0  ;;  %v1560_v21 = vrot.slane %v1559_v41, 2  ;;  %v1568_v55 = vadd.f32 %v1567_v15, %v1566_v1 }
 0x28d   : > { %v3677_v22 = vpop.eup %2784  ;;  %v1576_v18 = vrot.slane %v1575_v16, 4  ;;  %v1584_v8 = vadd.f32 %v1583_v47, %v1582_v17  ;;  %v1591_v23 = vsel %vm1306_vm1, %v3669_v2, 0.0  ;;  %v1592_v63 = vsel %vm1306_vm1, %v3675_v45, 0.0 }
 0x28e   : > { %v3683_v25 = vpop.eup %2786  ;;  %v1545_v26 = vadd.f32 %v1544_v19, %v1543_v42  ;;  %v1553_v13 = vrot.slane %v1552_v59, 1  ;;  %v1561_v27 = vadd.f32 %v1560_v21, %v1559_v41  ;;  %v1569_v14 = vrot.slane %v1568_v55, 2 }
 0x28f   : > { %v1577_v28 = vadd.f32 %v1576_v18, %v1575_v16  ;;  %v1585_v7 = vrot.slane %v1584_v8, 4  ;;  %v1593_v30 = vadd.f32 %v1592_v63, %v1591_v23  ;;  %v1600_v34 = vsel %vm1306_vm1, %v3677_v22, 0.0  ;;  %v2789_v63 = vpop.eup %2788 }
 0x290   : > { %v1554_v29 = vadd.f32 %v1553_v13, %v1552_v59  ;;  %v1562_v37 = vrot.slane %v1561_v27, 1  ;;  %v1570_v38 = vadd.f32 %v1569_v14, %v1568_v55  ;;  %v1601_v39 = vsel %vm1306_vm1, %v3683_v25, 0.0 }
 0x291   : > { %v1578_v43 = vrot.slane %v1577_v28, 2  ;;  %v1586_v49 = vadd.f32 %v1585_v7, %v1584_v8  ;;  %v1594_v50 = vrot.slane %v1593_v30, 4  ;;  %v1602_v52 = vadd.f32 %v1601_v39, %v1600_v34 }
 0x292   : > { %v1563_v56 = vadd.f32 %v1562_v37, %v1561_v27  ;;  %v1571_v57 = vrot.slane %v1570_v38, 1  ;;  %v1617_v58 = vsel %vm779_vm2, %v1554_v29, %v1545_v26 }
 0x293   : > { %v1579_v60 = vadd.f32 %v1578_v43, %v1577_v28  ;;  %v1587_v61 = vrot.slane %v1586_v49, 2  ;;  %v1595_v62 = vadd.f32 %v1594_v50, %v1593_v30  ;;  %v1603_v5 = vrot.slane %v1602_v52, 4 }
 0x294   : > { %v1572_v0 = vadd.f32 %v1571_v57, %v1570_v38  ;;  %v1618_v9 = vsel %vm782_vm3, %v1563_v56, %v1617_v58 }
 0x295   : > { %v1580_v1 = vrot.slane %v1579_v60, 1  ;;  %v1588_v12 = vadd.f32 %v1587_v61, %v1586_v49  ;;  %v1596_v11 = vrot.slane %v1595_v62, 2  ;;  %v1604_v42 = vadd.f32 %v1603_v5, %v1602_v52 }
 0x296   : > { %v1619_v33 = vsel %vm785_vm4, %v1572_v0, %v1618_v9 }
 0x297   : > { %v1581_v41 = vadd.f32 %v1580_v1, %v1579_v60  ;;  %v1589_v15 = vrot.slane %v1588_v12, 1  ;;  %v1597_v44 = vadd.f32 %v1596_v11, %v1595_v62  ;;  %v1605_v16 = vrot.slane %v1604_v42, 2 }
 0x299   : > { %v1590_v17 = vadd.f32 %v1589_v15, %v1588_v12  ;;  %v1598_v47 = vrot.slane %v1597_v44, 1  ;;  %v1606_v19 = vadd.f32 %v1605_v16, %v1604_v42  ;;  %v1620_v59 = vsel %vm788_vm5, %v1581_v41, %v1619_v33 }
 0x29b   : > { %v1599_v21 = vadd.f32 %v1598_v47, %v1597_v44  ;;  %v1607_v55 = vrot.slane %v1606_v19, 1  ;;  %v1621_v18 = vsel %vm3872_vm15, %v1590_v17, %v1620_v59 }
 0x29d   : > { %v1608_v8 = vadd.f32 %v1607_v55, %v1606_v19  ;;  %v1622_v23 = vsel %vm3873_vm9, %v1599_v21, %v1621_v18 }
 0x29f   : > { %v1623_v26 = vsel %vm3874_vm10, %v1608_v8, %v1622_v23 }
 0x2a0   : > { %v1625_v13 = vadd.f32 %v2789_v63, %v1623_v26 }
 0x2a2   : > { %2790 = vrcp.f32 %v1625_v13 }
 0x2af   : > { %v2791_v27 = vpop.eup %2790 }
 0x2b0   : > { %v1627_v14 = vmul.f32 %v2791_v27, %v2789_v63  ;;  %v1636_v28 = vrot.slane %v2791_v27, %v3446_v48  ;;  %v1629_v7 = vcombine.high %v2791_v27, %v2791_v27 }
 0x2b2   : > { %2616 = vmatmul.mubr.msk.f32.vlgmr.msra.gmra.mxu0 %vm1306_vm1, %v1627_v14  ;;  %v1652_v30 = vrot.slane %v1636_v28, %v3446_v48  ;;  %v1644_v34 = vcombine.high %v1636_v28, %v1636_v28  ;;  %v1643_v29 = vrot.slane %v1629_v7, %v3446_v48 }
 0x2b3   : > { %2619 = vmatpush3.msk.msra.mxu0 %vm1737_vm8, %v3508_v40 }
 0x2b4   : > { %v1681_v37 = vrot.slane %v1652_v30, %v3450_v53  ;;  %v1666_v38 = vrot.slane %v1644_v34, %v3446_v48  ;;  %v1674_v39 = vcombine.high %v1652_v30, %v1652_v30  ;;  %v1659_v43 = vrot.slane %v1643_v29, %v3446_v48 }
 0x2b5   : > { %v1645_v49 = vcombine.high %v1643_v29, %v1643_v29 }
 0x2b6   : > { %v1718_v50 = vmul.f32 %v3623_v24, %v1681_v37  ;;  %v1719_v52 = vmul.f32 %v3625_v31, %v1681_v37  ;;  %v1685_v56 = vrot.slane %v1666_v38, %v3450_v53  ;;  %v1689_v57 = vrot.slane %v1674_v39, %v3450_v53 }
 0x2b7   : > { %v1676_v58 = vcombine.high %v1666_v38, %v1666_v38  ;;  %v1697_v60 = vrot.slane %v1659_v43, %v3450_v53  ;;  %v1673_v40 = vrot.slane %v1645_v49, %v3446_v48  ;;  %v1675_v61 = vcombine.high %v1659_v43, %v1659_v43 }
 0x2b8   : > { %2620 = vmatprep.mubr.msk.f32.mxu0 %vm1306_vm1, %v1718_v50  ;;  %v1720_v62 = vmul.f32 %v3629_v46, %v1685_v56  ;;  %v1723_v5 = vmul.f32 %v3641_v6, %v1689_v57  ;;  %v1721_v48 = vmul.f32 %v3633_v36, %v1685_v56 }
 0x2b9   : > { %2621 = vmatmul.mubr.msk.f32.vlgmr.msra.gmra.mxu0 %vm1306_vm1, %v1719_v52  ;;  %v1693_v24 = vrot.slane %v1676_v58, %v3450_v53  ;;  %v1726_v31 = vmul.f32 %v3653_v32, %v1697_v60  ;;  %v1727_v0 = vmul.f32 %v3659_v4, %v1697_v60  ;;  %v1701_v9 = vrot.slane %v1673_v40, %v3450_v53 }
 0x2ba   : > { %2623 = vmatprep.mubr.msk.f32.mxu0 %vm1306_vm1, %v1720_v62  ;;  %v1705_v1 = vrot.slane %v1675_v61, %v3450_v53  ;;  %v1677_v12 = vcombine.high %v1673_v40, %v1673_v40  ;;  %v1722_v32 = vmul.f32 %v3637_v20, %v1689_v57  ;;  %v2755_v20 = vld [vmem:[#allocation10] sm:$0xff]  }
 0x2bb   : > { %v1724_v46 = vmul.f32 %v3645_v51, %v1693_v24  ;;  %v1725_v6 = vmul.f32 %v3649_v54, %v1693_v24  ;;  %v1728_v11 = vmul.f32 %v3661_v10, %v1701_v9  ;;  %v1729_v42 = vmul.f32 %v3667_v3, %v1701_v9  ;;  %v2030_v54 = vpop.permute.xlu1 %2029  ;;  %v2026_v10 = vpop.permute.xlu0 %2025 }
 0x2bc   : > { %v1730_v4 = vmul.f32 %v3669_v2, %v1705_v1  ;;  %v1731_v33 = vmul.f32 %v3675_v45, %v1705_v1  ;;  %v1709_v41 = vrot.slane %v1677_v12, %v3450_v53  ;;  %v2754_v53 = vld [vmem:[#allocation10 + $0x8] sm:$0xff]  }
 0x2bd   : > { %2624 = vmatmul.mubr.msk.f32.gmra.mxu0 %vm1306_vm1, %v1721_v48  ;;  %2645 = vmatpush3.bf16.msra.mxu1 %v2754_v53 }
 0x2be   : > { %2626 = vmatprep.mubr.msk.f32.mxu0 %vm1306_vm1, %v1722_v32  ;;  %v1732_v36 = vmul.f32 %v3677_v22, %v1709_v41  ;;  %v1733_v51 = vmul.f32 %v3683_v25, %v1709_v41  ;;  %2646 = vmatprep.subr.bf16.mxu1 %v3005_v35 }
 0x2bf   : > { %v2032_v3 = vpop.permute.xlu1 %2031  ;;  %v3746_v2 = vpop.permute.xlu0 %2049 }
 0x2c1   : > { %2627 = vmatmul.mubr.msk.f32.gmra.mxu0 %vm1306_vm1, %v1723_v5  ;;  %2647 = vmatpush3.bf16.msra.mxu1 %v2755_v20 }
 0x2c2   : > { %2629 = vmatprep.mubr.msk.f32.mxu0 %vm1306_vm1, %v1724_v46 }
 0x2c3   : > { %v3748_v45 = vpop.permute.xlu1 %2051  ;;  %v2028_v25 = vpop.permute.xlu0 %2027 }
 0x2c5   : > { %2630 = vmatmul.mubr.msk.f32.gmra.mxu0 %vm1306_vm1, %v1725_v6 }
 0x2c6   : > { %2632 = vmatprep.mubr.msk.f32.mxu0 %vm1306_vm1, %v1726_v31 }
 0x2c7   : > { %v2040_v44 = vpop.permute.xlu1 %2039  ;;  %v2038_v16 = vpop.permute.xlu0 %2037 }
 0x2c9   : > { %2633 = vmatmul.mubr.msk.f32.gmra.mxu0 %vm1306_vm1, %v1727_v0 }
 0x2ca   : > { %2635 = vmatprep.mubr.msk.f32.mxu0 %vm1306_vm1, %v1728_v11 }
 0x2cb   : > { %v2036_v19 = vpop.permute.xlu1 %2035  ;;  %v2034_v35 = vpop.permute.xlu0 %2033 }
 0x2cd   : > { %2636 = vmatmul.mubr.msk.f32.gmra.mxu0 %vm1306_vm1, %v1729_v42 }
 0x2ce   : > { %2638 = vmatprep.mubr.msk.f32.mxu0 %vm1306_vm1, %v1730_v4 }
 0x2cf   : > { %v2048_v63 = vpop.permute.xlu1 %2047  ;;  %v2046_v7 = vpop.permute.xlu0 %2045 }
 0x2d1   : > { %2639 = vmatmul.mubr.msk.f32.gmra.mxu0 %vm1306_vm1, %v1731_v33 }
 0x2d2   : > { %2641 = vmatprep.mubr.msk.f32.mxu0 %vm1306_vm1, %v1732_v36 }
 0x2d3   : > { %v2044_v57 = vpop.permute.xlu1 %2043  ;;  %v2042_v5 = vpop.permute.xlu0 %2041 }
 0x2d5   : > { %2642 = vmatmul.mubr.msk.f32.gmra.mxu0 %vm1306_vm1, %v1733_v51 }
 0x372   : > { %v3750_v22 = vpop.f32.mrf.mxu0 }
 0x374   : > { %v2617_v15 = vpop.f32.mrf.mxu0 }
 0x379   : > { %v2622_v17 = vpop.f32.mrf.mxu0 }
 0x37a   : > { %v2074_v27 = vmul.f32 %v2622_v17, %v2028_v25 }
 0x37b   : > { %v1925_v47 = vpop.f32.mrf.mxu0 }
 0x37c   : > { %v2073_v8 = vmul.f32 %v2026_v10, %v1925_v47  ;;  %v2090_v50 = vsel %vm444_vm0, %v2074_v27, 0.0 }
 0x37d   : > { %v2625_v59 = vpop.f32.mrf.mxu0 }
 0x37e   : > { %v2076_v23 = vmul.f32 %v2625_v59, %v2032_v3  ;;  %v2089_v34 = vsel %vm444_vm0, %v2073_v8, 0.0  ;;  %v2056_v59 = vpop.permute.xlu1 %2055 }
 0x37f   : > { %v1935_v21 = vpop.f32.mrf.mxu0  ;;  %v2091_v58 = vadd.f32 %v2090_v50, %v2089_v34 }
 0x380   : > { %v2075_v55 = vmul.f32 %v2030_v54, %v1935_v21  ;;  %v2099_v29 = vsel %vm444_vm0, %v2076_v23, 0.0 }
 0x381   : > { %v2628_v18 = vpop.f32.mrf.mxu0  ;;  %v2092_v1 = vrot.slane %v2091_v58, 4 }
 0x382   : > { %v2078_v26 = vmul.f32 %v2628_v18, %v2036_v19  ;;  %v2098_v14 = vsel %vm444_vm0, %v2075_v55, 0.0 }
 0x383   : > { %v1945_v13 = vpop.f32.mrf.mxu0  ;;  %v2100_v39 = vadd.f32 %v2099_v29, %v2098_v14  ;;  %v2093_v51 = vadd.f32 %v2092_v1, %v2091_v58 }
 0x384   : > { %v2077_v28 = vmul.f32 %v2034_v35, %v1945_v13  ;;  %v2108_v43 = vsel %vm444_vm0, %v2078_v26, 0.0  ;;  %v2054_v13 = vpop.permute.xlu0 %2053 }
 0x385   : > { %v2631_v30 = vpop.f32.mrf.mxu0  ;;  %v2101_v24 = vrot.slane %v2100_v39, 4  ;;  %v2094_v35 = vrot.slane %v2093_v51, 2 }
 0x386   : > { %v2107_v37 = vsel %vm444_vm0, %v2077_v28, 0.0  ;;  %v2080_v38 = vmul.f32 %v2631_v30, %v2040_v44 }
 0x387   : > { %v1955_v49 = vpop.f32.mrf.mxu0  ;;  %v2109_v52 = vadd.f32 %v2108_v43, %v2107_v37  ;;  %v2102_v32 = vadd.f32 %v2101_v24, %v2100_v39  ;;  %v2095_v34 = vadd.f32 %v2094_v35, %v2093_v51 }
 0x388   : > { %v2079_v56 = vmul.f32 %v2038_v16, %v1955_v49  ;;  %v2117_v40 = vsel %vm444_vm0, %v2080_v38, 0.0 }
 0x389   : > { %v2634_v60 = vpop.f32.mrf.mxu0  ;;  %v2110_v9 = vrot.slane %v2109_v52, 4  ;;  %v2103_v15 = vrot.slane %v2102_v32, 2  ;;  %v2096_v58 = vrot.slane %v2095_v34, 1 }
 0x38a   : > { %v2116_v61 = vsel %vm444_vm0, %v2079_v56, 0.0  ;;  %v2082_v62 = vmul.f32 %v2634_v60, %v2044_v57 }
 0x38b   : > { %v2118_v31 = vadd.f32 %v2117_v40, %v2116_v61  ;;  %v1965_v0 = vpop.f32.mrf.mxu0  ;;  %v2111_v41 = vadd.f32 %v2110_v9, %v2109_v52 }
 0x38c   : > { %v2081_v48 = vmul.f32 %v2042_v5, %v1965_v0  ;;  %v2126_v6 = vsel %vm444_vm0, %v2082_v62, 0.0 }
 0x38d   : > { %v2119_v12 = vrot.slane %v2118_v31, 4  ;;  %v2637_v46 = vpop.f32.mrf.mxu0  ;;  %v2112_v47 = vrot.slane %v2111_v41, 2 }
 0x38e   : > { %v2125_v11 = vsel %vm444_vm0, %v2081_v48, 0.0  ;;  %v2084_v42 = vmul.f32 %v2637_v46, %v2048_v63  ;;  %v2097_v48 = vadd.f32 %v2096_v58, %v2095_v34 }
 0x38f   : > { %v2127_v4 = vadd.f32 %v2126_v6, %v2125_v11  ;;  %v1975_v33 = vpop.f32.mrf.mxu0  ;;  %v2120_v53 = vadd.f32 %v2119_v12, %v2118_v31 }
 0x390   : > { %v2083_v36 = vmul.f32 %v2046_v7, %v1975_v33  ;;  %v2135_v10 = vsel %vm444_vm0, %v2084_v42, 0.0  ;;  %v2113_v7 = vadd.f32 %v2112_v47, %v2111_v41 }
 0x391   : > { %v2128_v20 = vrot.slane %v2127_v4, 4  ;;  %v2640_v54 = vpop.f32.mrf.mxu0  ;;  %v2121_v21 = vrot.slane %v2120_v53, 2 }
 0x392   : > { %v2134_v3 = vsel %vm444_vm0, %v2083_v36, 0.0  ;;  %v2086_v25 = vmul.f32 %v2640_v54, %v3748_v45  ;;  %v2104_v45 = vadd.f32 %v2103_v15, %v2102_v32  ;;  %v2114_v57 = vrot.slane %v2113_v7, 1 }
 0x393   : > { %v2129_v44 = vadd.f32 %v2128_v20, %v2127_v4  ;;  %v2136_v16 = vadd.f32 %v2135_v10, %v2134_v3  ;;  %v1985_v17 = vpop.f32.mrf.mxu0 }
 0x394   : > { %v2085_v19 = vmul.f32 %v3746_v2, %v1985_v17  ;;  %v2144_v23 = vsel %vm444_vm0, %v2086_v25, 0.0  ;;  %v2122_v2 = vadd.f32 %v2121_v21, %v2120_v53  ;;  %v2105_v49 = vrot.slane %v2104_v45, 1  ;;  %v2006_v53 = vpop.permute.xlu0 %2005 }
 0x395   : > { %v2137_v55 = vrot.slane %v2136_v16, 4  ;;  %v2643_v18 = vpop.f32.mrf.mxu0  ;;  %v2130_v8 = vrot.slane %v2129_v44, 2  ;;  %v2115_v9 = vadd.f32 %v2114_v57, %v2113_v7  ;;  %v2008_v10 = vmul.f32 %v2006_v53, %v3750_v22 }
 0x396   : > { %v2143_v63 = vsel %vm444_vm0, %v2085_v19, 0.0  ;;  %v2088_v26 = vmul.f32 %v2643_v18, %v2056_v59  ;;  %v2123_v60 = vrot.slane %v2122_v2, 1  ;;  %v2106_v5 = vadd.f32 %v2105_v49, %v2104_v45 }
 0x397   : > { %v2138_v27 = vadd.f32 %v2137_v55, %v2136_v16  ;;  %v2145_v14 = vadd.f32 %v2144_v23, %v2143_v63  ;;  %v1995_v28 = vpop.f32.mrf.mxu0  ;;  %v2131_v38 = vadd.f32 %v2130_v8, %v2129_v44  ;;  %v2461_v16 = vld [vmem:[%s3838_s8] ss:$0 sm:$0xff] }
 0x398   : > { %v2087_v30 = vmul.f32 %v2054_v13, %v1995_v28  ;;  %v2153_v39 = vsel %vm444_vm0, %v2088_v26, 0.0  ;;  %v2124_v1 = vadd.f32 %v2123_v60, %v2122_v2  ;;  %v2169_v11 = vsel %vm779_vm2, %v2106_v5, %v2097_v48  ;;  %vm3877_vm2 = vmmov %vm3874_vm10 }
 0x399   : > { %v2139_v29 = vrot.slane %v2138_v27, 2  ;;  %v2146_v37 = vrot.slane %v2145_v14, 4  ;;  %v2132_v62 = vrot.slane %v2131_v38, 1  ;;  %v2170_v4 = vsel %vm782_vm3, %v2115_v9, %v2169_v11 }
 0x39a   : > { %v2152_v43 = vsel %vm444_vm0, %v2087_v30, 0.0  ;;  %v2171_v41 = vsel %vm785_vm4, %v2124_v1, %v2170_v4  ;;  %vm2245_vm3 = vcmask 523264  }
 0x39b   : > { %v2140_v50 = vadd.f32 %v2139_v29, %v2138_v27  ;;  %v2147_v52 = vadd.f32 %v2146_v37, %v2145_v14  ;;  %v2154_v56 = vadd.f32 %v2153_v39, %v2152_v43  ;;  %v2133_v6 = vadd.f32 %v2132_v62, %v2131_v38 }
 0x39d   : > { %v2148_v40 = vrot.slane %v2147_v52, 2  ;;  %v2155_v61 = vrot.slane %v2154_v56, 4  ;;  %v2141_v24 = vrot.slane %v2140_v50, 1  ;;  %v2172_v51 = vsel %vm788_vm5, %v2133_v6, %v2171_v41 }
 0x39f   : > { %v2149_v31 = vadd.f32 %v2148_v40, %v2147_v52  ;;  %v2156_v0 = vadd.f32 %v2155_v61, %v2154_v56  ;;  %v2142_v42 = vadd.f32 %v2141_v24, %v2140_v50 }
 0x3a1   : > { %v2150_v12 = vrot.slane %v2149_v31, 1  ;;  %v2157_v46 = vrot.slane %v2156_v0, 2  ;;  %v2173_v20 = vsel %vm3875_vm6, %v2142_v42, %v2172_v51 }
 0x3a3   : > { %v2158_v32 = vadd.f32 %v2157_v46, %v2156_v0  ;;  %v2151_v33 = vadd.f32 %v2150_v12, %v2149_v31 }
 0x3a5   : > { %v2159_v36 = vrot.slane %v2158_v32, 1  ;;  %v2174_v3 = vsel %vm3876_vm7, %v2151_v33, %v2173_v20 }
 0x3a7   : > { %v2160_v54 = vadd.f32 %v2159_v36, %v2158_v32 }
 0x3a9   : > { %v2175_v25 = vsel %vm3877_vm2, %v2160_v54, %v2174_v3 }
 0x3aa   : > { %v2177_v15 = vadd.f32 %v2175_v25, %v2008_v10 }
 0x3ac   : > { %v2178_v44 = vpack.c.bf16 %v2177_v15, %v2177_v15 }
 0x3ae   : > { %2649 = vmatmul.mubr.msk.bf16.vlgmr.msra.gmra.mxu1 %vm444_vm0, %v2178_v44 }
 0x46e   : > { %v2239_v17 = vpop.f32.mrf.mxu1 }
 0x46f   : > { %v2240_v22 = vadd.f32 %v2461_v16, %v2239_v17 }
 0x470   : > { %v2650_v47 = vpop.f32.mrf.mxu1 }
 0x471   : > { %2246 = vst.msk [vmem:[%s409_s5] sm:$0xff] %vm2245_vm3, %v2240_v22 }
 0x472   : > { %v2242_v19 = vpop.f32.mrf.mxu1 }
 0x473   : > { %2937 = shalt.err (!%p2934_p5)
}
 0x474   : > { %s2938_s21 = scalar_lea.hbm %s3787_s17, 128  ;;  %s2942_s28 = scalar_lea.hbm %s3839_s9, 256 }
 0x475   : > { %p2939_p6 = scmp.ne.s32.totalorder %s3787_s17, %s2938_s21  ;;  %p2943_p9 = scmp.lt.s32.totalorder %s3787_s17, %s3839_s9 }
 0x476   : > { %p2944_p2 = scmp.lt.s32.totalorder %s2942_s28, %s2938_s21 }
 0x477   : > { %p2940_p4 = pnand %p2939_p6, %p3878_p12 }
 0x478   : > { %p2945_p3 = por %p2944_p2, %p2943_p9 }
 0x479   : > { %p2941_p8 = pneg %p2940_p4 }
 0x47b   : > { %p2946_p10 = pnand %p2945_p3, %p2941_p8 }
 0x47d   : > { %2949 = shalt.err (!%p2946_p10)
}
 0x47e   : > { %2674 = dma.vmem_to_hbm [thread:$0]  (%p3878_p12), %s3789_s22, 128, %s3787_s17, %s2248_s26   ;;  %v2651_v59 = vpop.f32.mrf.mxu1 }
 0x47f PF: > { %s2273_s5 = sand.u32 1, %s2984_s30   ;;  %p3879_p7 = scmp.ne.s32.totalorder %s3853_s16, 0 }
 0x480   : > { %p3880_p1 = scmp.ge.s32.totalorder %s2996_s12, 2  ;;  %s2274_s24 = scalar_lea.sflag [#allocation4], %s2273_s5 }
 0x482   : > { %p2694_p13 = pnand %p3880_p1, %p3879_p7 }
 0x484   : > { %p2695_p0 = pneg %p2694_p13 }
 0x486   : > { %2979 = dma.done.wait (%p2695_p0), %s2274_s24, 128  }
 0x487   : > { %2981 = vsyncadd (%p2695_p0), %s2274_s24, 4294967168  ;;  %p24_p11 = scmp.ge.s32.totalorder %s3161_s18, 4   ;;  %s3881_s30 = smov %s2988_s10 }
 0x488   : > { %s3882_s10 = smov %s2992_s11  ;;  %s3883_s11 = smov %s3177_s23 }
 0x489   : > { %s3884_s12 = smov %s3161_s18  ;;  %26 = sbr.rel (!%p24_p11) target bundleno = 11 (0xb), region = 117 }
 0x48e   :  { %2279 = vsyncpa [#allocation3], 1 }
 0x48f   :  { %2281 = vsyncpa [#allocation3 + $0x1], 1 }
 0x490   :  { %2282 = vsyncpa [#allocation6], 1 }
 0x491   :  { %2283 = vsyncpa [#allocation9], 1 }
 0x492   :  { %2284 = vsyncpa [#allocation4], 1 }
 0x493   :  { %2286 = vsyncpa [#allocation4 + $0x1], 1 }

</bundles_post_ra>
